<compile_context>
chip_gen: v5e
topology: v5e:2x2
jax: 0.10.0
libtpu: 0.0.40
codegen_flags: <defaults>
</compile_context>

<pallas_src>
import jax
import jax.numpy as jnp
from jax.experimental import pallas as pl
from jax.experimental.pallas import tpu as pltpu

IMAGE_SIZE = (1, 28, 28)
IN_DIM = IMAGE_SIZE[0] * IMAGE_SIZE[1] * IMAGE_SIZE[2]      # 784
K_PAD = 896                                                  # 7 * 128 (lane-aligned K)
DIMS = [IN_DIM, 512, 256, 128, 64, 32, 1]                    # layer widths

_SQRT_2_OVER_PI = 0.7978845608028654
_GELU_C = 0.044715


def _gelu_tanh(x):
    # tanh-approximate GELU: transcendental goes to the EUP, freeing VALU cycles.
    return 0.5 * x * (1.0 + jnp.tanh(_SQRT_2_OVER_PI * (x + _GELU_C * x * x * x)))


def _round_up(x, m):
    return ((x + m - 1) // m) * m


def _disc_kernel(x_ref,
                 w1, b1, w2, b2, w3, b3, w4, b4, w5, b5, w6t, b6,
                 out_ref):
    # x_ref: (tb, K_PAD) bf16.  w1..w5: (K, N) bf16.  biases: (1, N) f32.
    # w6t: (1, 32) f32 (transposed last-layer weight), b6: (1, 1) f32.
    h = x_ref[...]
    h = _gelu_tanh(jnp.dot(h, w1[...], preferred_element_type=jnp.float32) + b1[...])
    h = _gelu_tanh(jnp.dot(h.astype(jnp.bfloat16), w2[...],
                           preferred_element_type=jnp.float32) + b2[...])
    h = _gelu_tanh(jnp.dot(h.astype(jnp.bfloat16), w3[...],
                           preferred_element_type=jnp.float32) + b3[...])
    h = _gelu_tanh(jnp.dot(h.astype(jnp.bfloat16), w4[...],
                           preferred_element_type=jnp.float32) + b4[...])
    h = _gelu_tanh(jnp.dot(h.astype(jnp.bfloat16), w5[...],
                           preferred_element_type=jnp.float32) + b5[...])
    # Final 32 -> 1 projection on VPU + XLU reduce (avoid a 1-lane MXU pass).
    logits = jnp.sum(h * w6t[...], axis=-1, keepdims=True) + b6[...]
    out_ref[...] = jax.nn.sigmoid(logits).astype(out_ref.dtype)


def init_params(key):
    """nn.Linear-style init: U[-1/sqrt(fan_in), +1/sqrt(fan_in)].

    Weights stored as (in_features, out_features) f32; biases as (1, out_features) f32.
    """
    params = []
    for li in range(len(DIMS) - 1):
        fan_in, fan_out = DIMS[li], DIMS[li + 1]
        key, kw, kb = jax.random.split(key, 3)
        bound = 1.0 / jnp.sqrt(jnp.float32(fan_in))
        w = jax.random.uniform(kw, (fan_in, fan_out), jnp.float32, -bound, bound)
        b = jax.random.uniform(kb, (1, fan_out), jnp.float32, -bound, bound)
        params.append((w, b))
    return params


def _prepare_params(params):
    """Pad w1's K to 896, cast matmul weights to bf16, keep biases / last layer f32."""
    flat = []
    n_layers = len(params)
    for li, (w, b) in enumerate(params):
        if li == 0:
            w = jnp.pad(w, ((0, K_PAD - IN_DIM), (0, 0)))        # zero rows: exact
        if li < n_layers - 1:
            flat += [w.astype(jnp.bfloat16), b.astype(jnp.float32)]
        else:
            flat += [w.T.astype(jnp.float32), b.astype(jnp.float32)]   # (1, 32) row
    return flat


def discriminator_forward(image, params, *, batch_tile=256):
    """image: [B, 1, 28, 28] (NCHW, like PyTorch). Returns [B, 1] f32 probabilities.

    batch_tile: rows per grid step. Prefer multiples of 256 on v6e/v7x, 128 on v5e.
    It is clamped for small batches and halved (when possible) so the grid has at
    least 2 steps, letting the parallel batch axis shard across v7x's 2 TensorCores.
    """
    B = image.shape[0]
    x = image.reshape(B, -1).astype(jnp.float32)                 # [B, 784]
    assert x.shape[1] == IN_DIM

    tb = max(8, min(batch_tile, _round_up(B, 8)))
    if B > 8 and _round_up(B, tb) // tb < 2:
        tb = max(8, _round_up(_round_up(B, 8) // 2, 8))          # ensure >= 2 grid steps
    Bp = _round_up(B, tb)

    # Pad batch to the tile, pad features 784 -> 896, cast activations to bf16.
    x = jnp.pad(x, ((0, Bp - B), (0, K_PAD - IN_DIM))).astype(jnp.bfloat16)

    flat_params = _prepare_params(params)
    # Weights/biases: full-array blocks with a constant index_map (VMEM residents,
    # ~1.3 MB total in bf16 — no re-DMA across grid steps).
    param_specs = [pl.BlockSpec(p.shape, lambda i: (0, 0)) for p in flat_params]

    out = pl.pallas_call(
        _disc_kernel,
        out_shape=jax.ShapeDtypeStruct((Bp, 1), jnp.float32),
        grid_spec=pltpu.PrefetchScalarGridSpec(
            num_scalar_prefetch=0,
            grid=(Bp // tb,),
            in_specs=[pl.BlockSpec((tb, K_PAD), lambda i: (i, 0))] + param_specs,
            out_specs=pl.BlockSpec((tb, 1), lambda i: (i, 0)),
        ),
        compiler_params=pltpu.CompilerParams(
            dimension_semantics=("parallel",),
        ),
    )(x, *flat_params)

    return out[:B]


def _reference_exact(image, params):
    """PyTorch-semantics reference: f32 matmuls, exact erf GELU."""
    x = image.reshape(image.shape[0], -1).astype(jnp.float32)
    for li, (w, b) in enumerate(params):
        x = x @ w + b
        if li < len(params) - 1:
            x = jax.nn.gelu(x, approximate=False)
    return jax.nn.sigmoid(x)


def _reference_matched(image, params):
    """Reference mimicking kernel numerics: bf16 MXU operands, f32 accum, tanh GELU."""
    h = image.reshape(image.shape[0], -1).astype(jnp.float32)
    for (w, b) in params[:-1]:
        y = jnp.dot(h.astype(jnp.bfloat16), w.astype(jnp.bfloat16),
                    preferred_element_type=jnp.float32) + b
        h = _gelu_tanh(y)
    w6, b6 = params[-1]
    logits = jnp.sum(h * w6.T, axis=-1, keepdims=True) + b6
    return jax.nn.sigmoid(logits)


if __name__ == "__main__":
    key = jax.random.PRNGKey(0)
    k_img, k_par = jax.random.split(key)

    B = 16
    image = jax.random.normal(k_img, (B, *IMAGE_SIZE), jnp.float32)   # NCHW like PyTorch
    params = init_params(k_par)

    prob = discriminator_forward(image, params)
    prob = jax.block_until_ready(prob)

    assert prob.shape == (B, 1)
    ref_matched = _reference_matched(image, params)       # same numerics as kernel
    ref_exact = _reference_exact(image, params)           # f32 / exact-erf (PyTorch)
    assert jnp.max(jnp.abs(prob - ref_matched)) < 5e-3
    assert jnp.max(jnp.abs(prob - ref_exact)) < 5e-2      # bf16 + tanh-GELU deviation

    print("KERNEL_OK")
</pallas_src>

<mosaic_0001>
module attributes {stable_mosaic.version = 11 : i64} {
  func.func @_disc_kernel(%arg0: i32, %arg1: memref<8x896xbf16, #tpu.memory_space<vmem>>, %arg2: memref<896x512xbf16, #tpu.memory_space<vmem>>, %arg3: memref<1x512xf32, #tpu.memory_space<vmem>>, %arg4: memref<512x256xbf16, #tpu.memory_space<vmem>>, %arg5: memref<1x256xf32, #tpu.memory_space<vmem>>, %arg6: memref<256x128xbf16, #tpu.memory_space<vmem>>, %arg7: memref<1x128xf32, #tpu.memory_space<vmem>>, %arg8: memref<128x64xbf16, #tpu.memory_space<vmem>>, %arg9: memref<1x64xf32, #tpu.memory_space<vmem>>, %arg10: memref<64x32xbf16, #tpu.memory_space<vmem>>, %arg11: memref<1x32xf32, #tpu.memory_space<vmem>>, %arg12: memref<1x32xf32, #tpu.memory_space<vmem>>, %arg13: memref<1x1xf32, #tpu.memory_space<vmem>>, %arg14: memref<8x1xf32, #tpu.memory_space<vmem>>) attributes {dimension_semantics = [#tpu.dimension_semantics<parallel>], iteration_bounds = array<i64: 2>, scalar_prefetch = 0 : i64, scratch_operands = 0 : i64, tpu.core_type = #tpu.core_type<tc>, window_params = [{transform_indices = @transform_0, window_bounds = array<i64: 8, 896>}, {pipeline_mode = #tpu.pipeline_mode<synchronous>, transform_indices = @transform_1, window_bounds = array<i64: 896, 512>}, {pipeline_mode = #tpu.pipeline_mode<synchronous>, transform_indices = @transform_2, window_bounds = array<i64: 1, 512>}, {pipeline_mode = #tpu.pipeline_mode<synchronous>, transform_indices = @transform_3, window_bounds = array<i64: 512, 256>}, {pipeline_mode = #tpu.pipeline_mode<synchronous>, transform_indices = @transform_4, window_bounds = array<i64: 1, 256>}, {pipeline_mode = #tpu.pipeline_mode<synchronous>, transform_indices = @transform_5, window_bounds = array<i64: 256, 128>}, {pipeline_mode = #tpu.pipeline_mode<synchronous>, transform_indices = @transform_6, window_bounds = array<i64: 1, 128>}, {pipeline_mode = #tpu.pipeline_mode<synchronous>, transform_indices = @transform_7, window_bounds = array<i64: 128, 64>}, {pipeline_mode = #tpu.pipeline_mode<synchronous>, transform_indices = @transform_8, window_bounds = array<i64: 1, 64>}, {pipeline_mode = #tpu.pipeline_mode<synchronous>, transform_indices = @transform_9, window_bounds = array<i64: 64, 32>}, {pipeline_mode = #tpu.pipeline_mode<synchronous>, transform_indices = @transform_10, window_bounds = array<i64: 1, 32>}, {pipeline_mode = #tpu.pipeline_mode<synchronous>, transform_indices = @transform_11, window_bounds = array<i64: 1, 32>}, {pipeline_mode = #tpu.pipeline_mode<synchronous>, transform_indices = @transform_12, window_bounds = array<i64: 1, 1>}, {transform_indices = @transform_13, window_bounds = array<i64: 8, 1>}]} {
    %c0 = arith.constant 0 : index
    %c0_0 = arith.constant 0 : index
    %0 = vector.load %arg1[%c0, %c0_0] : memref<8x896xbf16, #tpu.memory_space<vmem>>, vector<8x896xbf16>
    %c0_1 = arith.constant 0 : index
    %c0_2 = arith.constant 0 : index
    %1 = vector.load %arg2[%c0_1, %c0_2] : memref<896x512xbf16, #tpu.memory_space<vmem>>, vector<896x512xbf16>
    %cst = arith.constant dense<0.000000e+00> : vector<8x512xf32>
    %2 = tpu.matmul %0, %1, %cst {dimension_numbers = #tpu.dot_dimension_numbers<[1], [0], [0], [1], [0, 0, 1, 1], [], []>} : vector<8x896xbf16>, vector<896x512xbf16>, vector<8x512xf32> -> vector<8x512xf32>
    %c0_3 = arith.constant 0 : index
    %c0_4 = arith.constant 0 : index
    %3 = vector.load %arg3[%c0_3, %c0_4] : memref<1x512xf32, #tpu.memory_space<vmem>>, vector<1x512xf32>
    %4 = vector.broadcast %3 : vector<1x512xf32> to vector<8x512xf32>
    %5 = arith.addf %2, %4 : vector<8x512xf32>
    %cst_5 = arith.constant 5.000000e-01 : f32
    %6 = vector.broadcast %cst_5 : f32 to vector<8x512xf32>
    %7 = arith.mulf %6, %5 : vector<8x512xf32>
    %cst_6 = arith.constant 4.471500e-02 : f32
    %8 = vector.broadcast %cst_6 : f32 to vector<8x512xf32>
    %9 = arith.mulf %8, %5 : vector<8x512xf32>
    %10 = arith.mulf %9, %5 : vector<8x512xf32>
    %11 = arith.mulf %10, %5 : vector<8x512xf32>
    %12 = arith.addf %5, %11 : vector<8x512xf32>
    %cst_7 = arith.constant 0.797884583 : f32
    %13 = vector.broadcast %cst_7 : f32 to vector<8x512xf32>
    %14 = arith.mulf %13, %12 : vector<8x512xf32>
    %15 = math.tanh %14 : vector<8x512xf32>
    %cst_8 = arith.constant 1.000000e+00 : f32
    %16 = vector.broadcast %cst_8 : f32 to vector<8x512xf32>
    %17 = arith.addf %16, %15 : vector<8x512xf32>
    %18 = arith.mulf %7, %17 : vector<8x512xf32>
    %19 = arith.truncf %18 : vector<8x512xf32> to vector<8x512xbf16>
    %c0_9 = arith.constant 0 : index
    %c0_10 = arith.constant 0 : index
    %20 = vector.load %arg4[%c0_9, %c0_10] : memref<512x256xbf16, #tpu.memory_space<vmem>>, vector<512x256xbf16>
    %cst_11 = arith.constant dense<0.000000e+00> : vector<8x256xf32>
    %21 = tpu.matmul %19, %20, %cst_11 {dimension_numbers = #tpu.dot_dimension_numbers<[1], [0], [0], [1], [0, 0, 1, 1], [], []>} : vector<8x512xbf16>, vector<512x256xbf16>, vector<8x256xf32> -> vector<8x256xf32>
    %c0_12 = arith.constant 0 : index
    %c0_13 = arith.constant 0 : index
    %22 = vector.load %arg5[%c0_12, %c0_13] : memref<1x256xf32, #tpu.memory_space<vmem>>, vector<1x256xf32>
    %23 = vector.broadcast %22 : vector<1x256xf32> to vector<8x256xf32>
    %24 = arith.addf %21, %23 : vector<8x256xf32>
    %cst_14 = arith.constant 5.000000e-01 : f32
    %25 = vector.broadcast %cst_14 : f32 to vector<8x256xf32>
    %26 = arith.mulf %25, %24 : vector<8x256xf32>
    %cst_15 = arith.constant 4.471500e-02 : f32
    %27 = vector.broadcast %cst_15 : f32 to vector<8x256xf32>
    %28 = arith.mulf %27, %24 : vector<8x256xf32>
    %29 = arith.mulf %28, %24 : vector<8x256xf32>
    %30 = arith.mulf %29, %24 : vector<8x256xf32>
    %31 = arith.addf %24, %30 : vector<8x256xf32>
    %cst_16 = arith.constant 0.797884583 : f32
    %32 = vector.broadcast %cst_16 : f32 to vector<8x256xf32>
    %33 = arith.mulf %32, %31 : vector<8x256xf32>
    %34 = math.tanh %33 : vector<8x256xf32>
    %cst_17 = arith.constant 1.000000e+00 : f32
    %35 = vector.broadcast %cst_17 : f32 to vector<8x256xf32>
    %36 = arith.addf %35, %34 : vector<8x256xf32>
    %37 = arith.mulf %26, %36 : vector<8x256xf32>
    %38 = arith.truncf %37 : vector<8x256xf32> to vector<8x256xbf16>
    %c0_18 = arith.constant 0 : index
    %c0_19 = arith.constant 0 : index
    %39 = vector.load %arg6[%c0_18, %c0_19] : memref<256x128xbf16, #tpu.memory_space<vmem>>, vector<256x128xbf16>
    %cst_20 = arith.constant dense<0.000000e+00> : vector<8x128xf32>
    %40 = tpu.matmul %38, %39, %cst_20 {dimension_numbers = #tpu.dot_dimension_numbers<[1], [0], [0], [1], [0, 0, 1, 1], [], []>} : vector<8x256xbf16>, vector<256x128xbf16>, vector<8x128xf32> -> vector<8x128xf32>
    %c0_21 = arith.constant 0 : index
    %c0_22 = arith.constant 0 : index
    %41 = vector.load %arg7[%c0_21, %c0_22] : memref<1x128xf32, #tpu.memory_space<vmem>>, vector<1x128xf32>
    %42 = vector.broadcast %41 : vector<1x128xf32> to vector<8x128xf32>
    %43 = arith.addf %40, %42 : vector<8x128xf32>
    %cst_23 = arith.constant 5.000000e-01 : f32
    %44 = vector.broadcast %cst_23 : f32 to vector<8x128xf32>
    %45 = arith.mulf %44, %43 : vector<8x128xf32>
    %cst_24 = arith.constant 4.471500e-02 : f32
    %46 = vector.broadcast %cst_24 : f32 to vector<8x128xf32>
    %47 = arith.mulf %46, %43 : vector<8x128xf32>
    %48 = arith.mulf %47, %43 : vector<8x128xf32>
    %49 = arith.mulf %48, %43 : vector<8x128xf32>
    %50 = arith.addf %43, %49 : vector<8x128xf32>
    %cst_25 = arith.constant 0.797884583 : f32
    %51 = vector.broadcast %cst_25 : f32 to vector<8x128xf32>
    %52 = arith.mulf %51, %50 : vector<8x128xf32>
    %53 = math.tanh %52 : vector<8x128xf32>
    %cst_26 = arith.constant 1.000000e+00 : f32
    %54 = vector.broadcast %cst_26 : f32 to vector<8x128xf32>
    %55 = arith.addf %54, %53 : vector<8x128xf32>
    %56 = arith.mulf %45, %55 : vector<8x128xf32>
    %57 = arith.truncf %56 : vector<8x128xf32> to vector<8x128xbf16>
    %c0_27 = arith.constant 0 : index
    %c0_28 = arith.constant 0 : index
    %58 = vector.load %arg8[%c0_27, %c0_28] : memref<128x64xbf16, #tpu.memory_space<vmem>>, vector<128x64xbf16>
    %cst_29 = arith.constant dense<0.000000e+00> : vector<8x64xf32>
    %59 = tpu.matmul %57, %58, %cst_29 {dimension_numbers = #tpu.dot_dimension_numbers<[1], [0], [0], [1], [0, 0, 1, 1], [], []>} : vector<8x128xbf16>, vector<128x64xbf16>, vector<8x64xf32> -> vector<8x64xf32>
    %c0_30 = arith.constant 0 : index
    %c0_31 = arith.constant 0 : index
    %60 = vector.load %arg9[%c0_30, %c0_31] : memref<1x64xf32, #tpu.memory_space<vmem>>, vector<1x64xf32>
    %61 = vector.broadcast %60 : vector<1x64xf32> to vector<8x64xf32>
    %62 = arith.addf %59, %61 : vector<8x64xf32>
    %cst_32 = arith.constant 5.000000e-01 : f32
    %63 = vector.broadcast %cst_32 : f32 to vector<8x64xf32>
    %64 = arith.mulf %63, %62 : vector<8x64xf32>
    %cst_33 = arith.constant 4.471500e-02 : f32
    %65 = vector.broadcast %cst_33 : f32 to vector<8x64xf32>
    %66 = arith.mulf %65, %62 : vector<8x64xf32>
    %67 = arith.mulf %66, %62 : vector<8x64xf32>
    %68 = arith.mulf %67, %62 : vector<8x64xf32>
    %69 = arith.addf %62, %68 : vector<8x64xf32>
    %cst_34 = arith.constant 0.797884583 : f32
    %70 = vector.broadcast %cst_34 : f32 to vector<8x64xf32>
    %71 = arith.mulf %70, %69 : vector<8x64xf32>
    %72 = math.tanh %71 : vector<8x64xf32>
    %cst_35 = arith.constant 1.000000e+00 : f32
    %73 = vector.broadcast %cst_35 : f32 to vector<8x64xf32>
    %74 = arith.addf %73, %72 : vector<8x64xf32>
    %75 = arith.mulf %64, %74 : vector<8x64xf32>
    %76 = arith.truncf %75 : vector<8x64xf32> to vector<8x64xbf16>
    %c0_36 = arith.constant 0 : index
    %c0_37 = arith.constant 0 : index
    %77 = vector.load %arg10[%c0_36, %c0_37] : memref<64x32xbf16, #tpu.memory_space<vmem>>, vector<64x32xbf16>
    %cst_38 = arith.constant dense<0.000000e+00> : vector<8x32xf32>
    %78 = tpu.matmul %76, %77, %cst_38 {dimension_numbers = #tpu.dot_dimension_numbers<[1], [0], [0], [1], [0, 0, 1, 1], [], []>} : vector<8x64xbf16>, vector<64x32xbf16>, vector<8x32xf32> -> vector<8x32xf32>
    %c0_39 = arith.constant 0 : index
    %c0_40 = arith.constant 0 : index
    %79 = vector.load %arg11[%c0_39, %c0_40] : memref<1x32xf32, #tpu.memory_space<vmem>>, vector<1x32xf32>
    %80 = vector.broadcast %79 : vector<1x32xf32> to vector<8x32xf32>
    %81 = arith.addf %78, %80 : vector<8x32xf32>
    %cst_41 = arith.constant 5.000000e-01 : f32
    %82 = vector.broadcast %cst_41 : f32 to vector<8x32xf32>
    %83 = arith.mulf %82, %81 : vector<8x32xf32>
    %cst_42 = arith.constant 4.471500e-02 : f32
    %84 = vector.broadcast %cst_42 : f32 to vector<8x32xf32>
    %85 = arith.mulf %84, %81 : vector<8x32xf32>
    %86 = arith.mulf %85, %81 : vector<8x32xf32>
    %87 = arith.mulf %86, %81 : vector<8x32xf32>
    %88 = arith.addf %81, %87 : vector<8x32xf32>
    %cst_43 = arith.constant 0.797884583 : f32
    %89 = vector.broadcast %cst_43 : f32 to vector<8x32xf32>
    %90 = arith.mulf %89, %88 : vector<8x32xf32>
    %91 = math.tanh %90 : vector<8x32xf32>
    %cst_44 = arith.constant 1.000000e+00 : f32
    %92 = vector.broadcast %cst_44 : f32 to vector<8x32xf32>
    %93 = arith.addf %92, %91 : vector<8x32xf32>
    %94 = arith.mulf %83, %93 : vector<8x32xf32>
    %c0_45 = arith.constant 0 : index
    %c0_46 = arith.constant 0 : index
    %95 = vector.load %arg12[%c0_45, %c0_46] : memref<1x32xf32, #tpu.memory_space<vmem>>, vector<1x32xf32>
    %96 = vector.broadcast %95 : vector<1x32xf32> to vector<8x32xf32>
    %97 = arith.mulf %94, %96 : vector<8x32xf32>
    %cst_47 = arith.constant dense<0.000000e+00> : vector<8xf32>
    %98 = vector.multi_reduction <add>, %97, %cst_47 [1] : vector<8x32xf32> to vector<8xf32>
    %99 = vector.shape_cast %98 : vector<8xf32> to vector<8x1xf32>
    %c0_48 = arith.constant 0 : index
    %c0_49 = arith.constant 0 : index
    %100 = vector.load %arg13[%c0_48, %c0_49] : memref<1x1xf32, #tpu.memory_space<vmem>>, vector<1x1xf32>
    %101 = vector.broadcast %100 : vector<1x1xf32> to vector<8x1xf32>
    %102 = arith.addf %99, %101 : vector<8x1xf32>
    %103 = arith.negf %102 : vector<8x1xf32>
    %104 = math.exp %103 : vector<8x1xf32>
    %cst_50 = arith.constant 1.000000e+00 : f32
    %105 = vector.broadcast %cst_50 : f32 to vector<8x1xf32>
    %106 = arith.addf %105, %104 : vector<8x1xf32>
    %107 = arith.divf %105, %106 : vector<8x1xf32>
    %c0_51 = arith.constant 0 : index
    %c0_52 = arith.constant 0 : index
    %108 = vector.load %arg14[%c0_51, %c0_52] : memref<8x1xf32, #tpu.memory_space<vmem>>, vector<8x1xf32>
    tpu.vector_store %arg14[%c0_51, %c0_52], %107 {strides = array<i32>} : memref<8x1xf32, #tpu.memory_space<vmem>>, vector<8x1xf32>,
    return
  }
  func.func @transform_0(%arg0: i32) -> (i32, i32) {
    %c0_i32 = arith.constant 0 : i32
    %c0_i32_0 = arith.constant 0 : i32
    return %arg0, %c0_i32 : i32, i32
  }
  func.func @transform_1(%arg0: i32) -> (i32, i32) {
    %c0_i32 = arith.constant 0 : i32
    %c0_i32_0 = arith.constant 0 : i32
    %c0_i32_1 = arith.constant 0 : i32
    return %c0_i32, %c0_i32_0 : i32, i32
  }
  func.func @transform_2(%arg0: i32) -> (i32, i32) {
    %c0_i32 = arith.constant 0 : i32
    %c0_i32_0 = arith.constant 0 : i32
    %c0_i32_1 = arith.constant 0 : i32
    return %c0_i32, %c0_i32_0 : i32, i32
  }
  func.func @transform_3(%arg0: i32) -> (i32, i32) {
    %c0_i32 = arith.constant 0 : i32
    %c0_i32_0 = arith.constant 0 : i32
    %c0_i32_1 = arith.constant 0 : i32
    return %c0_i32, %c0_i32_0 : i32, i32
  }
  func.func @transform_4(%arg0: i32) -> (i32, i32) {
    %c0_i32 = arith.constant 0 : i32
    %c0_i32_0 = arith.constant 0 : i32
    %c0_i32_1 = arith.constant 0 : i32
    return %c0_i32, %c0_i32_0 : i32, i32
  }
  func.func @transform_5(%arg0: i32) -> (i32, i32) {
    %c0_i32 = arith.constant 0 : i32
    %c0_i32_0 = arith.constant 0 : i32
    %c0_i32_1 = arith.constant 0 : i32
    return %c0_i32, %c0_i32_0 : i32, i32
  }
  func.func @transform_6(%arg0: i32) -> (i32, i32) {
    %c0_i32 = arith.constant 0 : i32
    %c0_i32_0 = arith.constant 0 : i32
    %c0_i32_1 = arith.constant 0 : i32
    return %c0_i32, %c0_i32_0 : i32, i32
  }
  func.func @transform_7(%arg0: i32) -> (i32, i32) {
    %c0_i32 = arith.constant 0 : i32
    %c0_i32_0 = arith.constant 0 : i32
    %c0_i32_1 = arith.constant 0 : i32
    return %c0_i32, %c0_i32_0 : i32, i32
  }
  func.func @transform_8(%arg0: i32) -> (i32, i32) {
    %c0_i32 = arith.constant 0 : i32
    %c0_i32_0 = arith.constant 0 : i32
    %c0_i32_1 = arith.constant 0 : i32
    return %c0_i32, %c0_i32_0 : i32, i32
  }
  func.func @transform_9(%arg0: i32) -> (i32, i32) {
    %c0_i32 = arith.constant 0 : i32
    %c0_i32_0 = arith.constant 0 : i32
    %c0_i32_1 = arith.constant 0 : i32
    return %c0_i32, %c0_i32_0 : i32, i32
  }
  func.func @transform_10(%arg0: i32) -> (i32, i32) {
    %c0_i32 = arith.constant 0 : i32
    %c0_i32_0 = arith.constant 0 : i32
    %c0_i32_1 = arith.constant 0 : i32
    return %c0_i32, %c0_i32_0 : i32, i32
  }
  func.func @transform_11(%arg0: i32) -> (i32, i32) {
    %c0_i32 = arith.constant 0 : i32
    %c0_i32_0 = arith.constant 0 : i32
    %c0_i32_1 = arith.constant 0 : i32
    return %c0_i32, %c0_i32_0 : i32, i32
  }
  func.func @transform_12(%arg0: i32) -> (i32, i32) {
    %c0_i32 = arith.constant 0 : i32
    %c0_i32_0 = arith.constant 0 : i32
    %c0_i32_1 = arith.constant 0 : i32
    return %c0_i32, %c0_i32_0 : i32, i32
  }
  func.func @transform_13(%arg0: i32) -> (i32, i32) {
    %c0_i32 = arith.constant 0 : i32
    %c0_i32_0 = arith.constant 0 : i32
    return %arg0, %c0_i32 : i32, i32
  }
}

</mosaic_0001>

<bundles_post_ra>
// kernel: tpu_custom_call.1
= control target key start
LH: loop header
LB: loop body
LE: loop exit
PB: predicated region body
PF: predicated region fallthrough
CT: control target
= control target key end

     0   :  { %s5298_s0 = inlined_call_operand.vmem [shape: bf16[16,896], index: 0, kind: input, shape index: {}]   ;;  %s5299_s1 = inlined_call_operand.hbm [shape: bf16[896,512], index: 1, kind: input, shape index: {}]   ;;  %s5300_s2 = inlined_call_operand.vmem [shape: f32[1,512], index: 2, kind: input, shape index: {}]   ;;  %s5301_s3 = inlined_call_operand.hbm [shape: bf16[512,256], index: 3, kind: input, shape index: {}]   ;;  %s5302_s4 = inlined_call_operand.vmem [shape: f32[1,256], index: 4, kind: input, shape index: {}]   ;;  %s5303_s5 = inlined_call_operand.hbm [shape: bf16[256,128], index: 5, kind: input, shape index: {}]   ;;  %s5304_s6 = inlined_call_operand.vmem [shape: f32[1,128], index: 6, kind: input, shape index: {}]   ;;  %s5305_s7 = inlined_call_operand.vmem [shape: bf16[128,64], index: 7, kind: input, shape index: {}]   ;;  %s5306_s8 = inlined_call_operand.vmem [shape: f32[1,64], index: 8, kind: input, shape index: {}]   ;;  %s5307_s9 = inlined_call_operand.vmem [shape: bf16[64,32], index: 9, kind: input, shape index: {}]   ;;  %s5308_s10 = inlined_call_operand.vmem [shape: f32[1,32], index: 10, kind: input, shape index: {}]   ;;  %s5309_s11 = inlined_call_operand.vmem [shape: f32[1,32], index: 11, kind: input, shape index: {}]   ;;  %s5310_s12 = inlined_call_operand.<no memory space> [shape: f32[1,1], index: 12, kind: input, shape index: {}]   ;;  %s5311_s13 = inlined_call_operand.vmem [shape: f32[16,1], index: 13, kind: output, shape index: {}]  }
   0x1   :  { %5312 = sst [smem:[#allocation10_spill]] %s5299_s1  ;;  %v18_v0 = vstv %s5310_s12 }
   0x2   :  { %5313 = sst [smem:[#allocation11_spill]] %s5301_s3  ;;  %19 = vst [vmem:[#allocation2] sm:$0x1] %v18_v0 }
   0x3   :  { %20 = vsyncpa [#allocation4], 0 }
   0x4   :  { %21 = vsyncpa [#allocation6], 0  ;;  %s5091_s27 = smov 0  }
   0x5 LB: > { %s5314_s3 = sld [smem:[#allocation11_spill]]  ;;  %s5100_s14 = sadd.s32 4294967295, %s5007_s27   ;;  %s5007_s27 = sphi %s5091_s27, %s27_s27  }
   0x6   : > { %p3235_p0 = scmp.ge.s32.totalorder %s5007_s27, 1  ;;  %p336_p1 = scmp.lt.s32.totalorder %s5007_s27, 3 }
   0x7   : > { %p4853_p2 = scmp.eq.s32.totalorder %s5100_s14, 0  ;;  %s5009_s15 = smov [#allocation5]  }
   0x8   : > { %p5105_p3 = pnand %p3235_p0, %p336_p1  ;;  %s366_s16 = sshll.u32 %s5009_s15, 4  ;;  %s367_s16 = int_to_ptr.vmem [resolvable:$true] %s366_s16 }
   0x9   : > { %s5316_s1 = sld [smem:[#allocation10_spill]]  ;;  %s5010_s21 = smov [#allocation3]  }
   0xa   : > { %p4843_p4 = pneg %p5105_p3  ;;  %s349_s22 = sshll.u32 %s5010_s21, 4  ;;  %s350_s22 = int_to_ptr.vmem [resolvable:$true] %s349_s22 }
   0xb   : > { %s364_s30 = sshll.u32 %s5314_s3, 4  ;;  %s5011_s23 = smov 128   ;;  %s365_s30 = int_to_ptr.hbm [resolvable:$true] %s364_s30 }
   0xc   : > { %p5116_p5 = pnand %p4853_p2, %p4843_p4  ;;  %s5012_s24 = smov 8  }
   0xd   : > { %s381_s28 = sshll.u32 %s5303_s5, 4  ;;  %s5013_s29 = smov 256   ;;  %s382_s28 = int_to_ptr.hbm [resolvable:$true] %s381_s28 }
   0xe   : > { %4849 = dma.hbm_to_vmem [thread:$0]  (!%p5116_p5), %s365_s30, 8192, %s367_s16, [#allocation6], %s5011_s23, %s5011_s23, %s5012_s24  }
   0xf   : > { %s347_s19 = sshll.u32 %s5316_s1, 4  ;;  %s5014_s15 = smov 16   ;;  %s348_s19 = int_to_ptr.hbm [resolvable:$true] %s347_s19 }
  0x10   : > { %4846 = dma.hbm_to_vmem [thread:$0]  (!%p5116_p5), %s348_s19, 28672, %s350_s22, [#allocation4], %s5013_s29, %s5013_s29, %s5014_s15  }
  0x11   : > { %s5015_s17 = smov [#allocation7]   ;;  %s5016_s1 = smov 64  }
  0x12   : > { %s383_s18 = sshll.u32 %s5015_s17, 4  ;;  %s5017_s3 = smov 4   ;;  %s384_s18 = int_to_ptr.vmem [resolvable:$true] %s383_s18 }
  0x13   : > { %4852 = dma.hbm_to_vmem [thread:$0]  (!%p5116_p5), %s382_s28, 2048, %s384_s18, [#allocation6], %s5016_s1, %s5016_s1, %s5017_s3  }
  0x14   : > { %428 = sbr.rel (%p5105_p3) target bundleno = 1201 (0x4b1), region = 72 }
  0x19   : > { %4998 = dma.done.wait (%p4853_p2), [#allocation4], 28672  }
  0x1a   : > { %5000 = vsyncadd (%p4853_p2), [#allocation4], 4294938624 }
  0x1b   : > { %5002 = dma.done.wait (%p4853_p2), [#allocation6], 10240  }
  0x1c   : > { %5004 = vsyncadd (%p4853_p2), [#allocation6], 4294957056  ;;  %v3360_v1 = vld [vmem:[#allocation3 + $0xe0] sm:$0xf]  ;;  %v4544_v2 = vld [vmem:[#allocation3 + $0xec] sm:$0xf0] }
  0x1d   : > { %v3488_v3 = vld [vmem:[#allocation3 + $0x1e0] sm:$0xf]  ;;  %v3361_v4 = vor.u32 %v4544_v2, %v3360_v1  ;;  %v4576_v5 = vld [vmem:[#allocation3 + $0x1ec] sm:$0xf0]  ;;  %p482_p6 = scmp.lt.s32.totalorder %s5100_s14, 1  ;;  %vm3088_vm0 = vcmask 523264  }
  0x1e   : > { %v3616_v6 = vld [vmem:[#allocation3 + $0x2e0] sm:$0xf]  ;;  %v4608_v7 = vld [vmem:[#allocation3 + $0x2ec] sm:$0xf0]  ;;  %v3489_v8 = vor.u32 %v4576_v5, %v3488_v3  ;;  %vm3119_vm1 = vcmask 261120   ;;  %vm3147_vm5 = vcmask 7168  }
  0x1f   : > { %v3617_v9 = vor.u32 %v4608_v7, %v3616_v6  ;;  %v3744_v10 = vld [vmem:[#allocation3 + $0x3e0] sm:$0xf]  ;;  %v4640_v11 = vld [vmem:[#allocation3 + $0x3ec] sm:$0xf0]  ;;  %1875 = vmatpush.bf16.msra.mxu0 %v3361_v4  ;;  %s5319_s14 = smov (!%p482_p6, %s5100_s14), 1 }
  0x20   : > { %v3344_v12 = vld [vmem:[#allocation3 + $0xc0] sm:$0xf]  ;;  %v3745_v13 = vor.u32 %v4640_v11, %v3744_v10  ;;  %v4540_v14 = vld [vmem:[#allocation3 + $0xcc] sm:$0xf0]  ;;  %1888 = vmatpush.bf16.msra.mxu1 %v3489_v8  ;;  %s4830_s1 = smul.u32 28, %s5319_s14  ;;  %s3245_s16 = sshll.u32 %s5319_s14, 3 }
  0x21   : > { %v3472_v15 = vld [vmem:[#allocation3 + $0x1c0] sm:$0xf]  ;;  %v4572_v16 = vld [vmem:[#allocation3 + $0x1cc] sm:$0xf0]  ;;  %1901 = vmatpush.bf16.msra.mxu2 %v3617_v9  ;;  %v3345_v17 = vor.u32 %v4540_v14, %v3344_v12  ;;  %s490_s21 = scalar_lea.vmem %s5311_s13, %s3245_s16 }
  0x22   : > { %v3473_v18 = vor.u32 %v4572_v16, %v3472_v15  ;;  %v3600_v19 = vld [vmem:[#allocation3 + $0x2c0] sm:$0xf]  ;;  %v4604_v20 = vld [vmem:[#allocation3 + $0x2cc] sm:$0xf0]  ;;  %1914 = vmatpush.bf16.msra.mxu3 %v3745_v13  ;;  %s5151_s12 = scalar_lea.vmem %s5298_s0, %s4830_s1 }
  0x23   : > { %v3728_v21 = vld [vmem:[#allocation3 + $0x3c0] sm:$0xf]  ;;  %v3601_v22 = vor.u32 %v4604_v20, %v3600_v19  ;;  %v4636_v23 = vld [vmem:[#allocation3 + $0x3cc] sm:$0xf0]  ;;  %1876 = vmatpush.bf16.msra.mxu0 %v3345_v17 }
  0x24   : > { %v3328_v24 = vld [vmem:[#allocation3 + $0xa0] sm:$0xf]  ;;  %v4536_v25 = vld [vmem:[#allocation3 + $0xac] sm:$0xf0]  ;;  %v3729_v26 = vor.u32 %v4636_v23, %v3728_v21  ;;  %1889 = vmatpush.bf16.msra.mxu1 %v3473_v18 }
  0x25   : > { %v3456_v27 = vld [vmem:[#allocation3 + $0x1a0] sm:$0xf]  ;;  %v4568_v28 = vld [vmem:[#allocation3 + $0x1ac] sm:$0xf0]  ;;  %v3329_v30 = vor.u32 %v4536_v25, %v3328_v24  ;;  %1902 = vmatpush.bf16.msra.mxu2 %v3601_v22 }
  0x26   : > { %v3584_v29 = vld [vmem:[#allocation3 + $0x2a0] sm:$0xf]  ;;  %v4600_v31 = vld [vmem:[#allocation3 + $0x2ac] sm:$0xf0]  ;;  %v3457_v34 = vor.u32 %v4568_v28, %v3456_v27  ;;  %1915 = vmatpush.bf16.msra.mxu3 %v3729_v26 }
  0x27   : > { %v3712_v32 = vld [vmem:[#allocation3 + $0x3a0] sm:$0xf]  ;;  %v4632_v33 = vld [vmem:[#allocation3 + $0x3ac] sm:$0xf0]  ;;  %v3585_v35 = vor.u32 %v4600_v31, %v3584_v29  ;;  %1877 = vmatpush.bf16.msra.mxu0 %v3329_v30 }
  0x28   : > { %v3312_v36 = vld [vmem:[#allocation3 + $0x80] sm:$0xf]  ;;  %v4532_v37 = vld [vmem:[#allocation3 + $0x8c] sm:$0xf0]  ;;  %v3713_v39 = vor.u32 %v4632_v33, %v3712_v32  ;;  %1890 = vmatpush.bf16.msra.mxu1 %v3457_v34 }
  0x29   : > { %v3440_v38 = vld [vmem:[#allocation3 + $0x180] sm:$0xf]  ;;  %v4564_v40 = vld [vmem:[#allocation3 + $0x18c] sm:$0xf0]  ;;  %v3313_v45 = vor.u32 %v4532_v37, %v3312_v36  ;;  %1903 = vmatpush.bf16.msra.mxu2 %v3585_v35 }
  0x2a   : > { %v3568_v41 = vld [vmem:[#allocation3 + $0x280] sm:$0xf]  ;;  %v4596_v42 = vld [vmem:[#allocation3 + $0x28c] sm:$0xf0]  ;;  %v3441_v46 = vor.u32 %v4564_v40, %v3440_v38  ;;  %1916 = vmatpush.bf16.msra.mxu3 %v3713_v39  ;;  %v4542_v38 = vld [vmem:[#allocation3 + $0xe4] sm:$0xf] }
  0x2b   : > { %v3696_v43 = vld [vmem:[#allocation3 + $0x380] sm:$0xf]  ;;  %v4628_v44 = vld [vmem:[#allocation3 + $0x38c] sm:$0xf0]  ;;  %v3569_v47 = vor.u32 %v4596_v42, %v3568_v41  ;;  %1878 = vmatpush.bf16.msra.mxu0 %v3313_v45  ;;  %v3362_v39 = vld [vmem:[#allocation3 + $0xf0] sm:$0xf0] }
  0x2c   : > { %v3296_v48 = vld [vmem:[#allocation3 + $0x60] sm:$0xf]  ;;  %v4528_v49 = vld [vmem:[#allocation3 + $0x6c] sm:$0xf0]  ;;  %v3697_v51 = vor.u32 %v4628_v44, %v3696_v43  ;;  %1891 = vmatpush.bf16.msra.mxu1 %v3441_v46 }
  0x2d   : > { %v3424_v50 = vld [vmem:[#allocation3 + $0x160] sm:$0xf]  ;;  %v4560_v52 = vld [vmem:[#allocation3 + $0x16c] sm:$0xf0]  ;;  %v3297_v57 = vor.u32 %v4528_v49, %v3296_v48  ;;  %1904 = vmatpush.bf16.msra.mxu2 %v3569_v47  ;;  %v3365_v47 = vor.u32 %v4542_v38, %v3362_v39 }
  0x2e   : > { %v3552_v53 = vld [vmem:[#allocation3 + $0x260] sm:$0xf]  ;;  %v4592_v54 = vld [vmem:[#allocation3 + $0x26c] sm:$0xf0]  ;;  %v3425_v58 = vor.u32 %v4560_v52, %v3424_v50  ;;  %1917 = vmatpush.bf16.msra.mxu3 %v3697_v51  ;;  %v4538_v51 = vld [vmem:[#allocation3 + $0xc4] sm:$0xf] }
  0x2f   : > { %v3680_v55 = vld [vmem:[#allocation3 + $0x360] sm:$0xf]  ;;  %v4624_v56 = vld [vmem:[#allocation3 + $0x36c] sm:$0xf0]  ;;  %v3553_v59 = vor.u32 %v4592_v54, %v3552_v53  ;;  %1879 = vmatpush.bf16.msra.mxu0 %v3297_v57  ;;  %v3346_v52 = vld [vmem:[#allocation3 + $0xd0] sm:$0xf0] }
  0x30   : > { %v3280_v60 = vld [vmem:[#allocation3 + $0x40] sm:$0xf]  ;;  %v4524_v61 = vld [vmem:[#allocation3 + $0x4c] sm:$0xf0]  ;;  %v3681_v63 = vor.u32 %v4624_v56, %v3680_v55  ;;  %1892 = vmatpush.bf16.msra.mxu1 %v3425_v58  ;;  %v493_v53 = vld [vmem:[%s5151_s12 + $0x8] sm:$0xff] }
  0x31   : > { %v3408_v62 = vld [vmem:[#allocation3 + $0x140] sm:$0xf]  ;;  %v4556_v0 = vld [vmem:[#allocation3 + $0x14c] sm:$0xf0]  ;;  %v3281_v5 = vor.u32 %v4524_v61, %v3280_v60  ;;  %1905 = vmatpush.bf16.msra.mxu2 %v3553_v59  ;;  %v736_v56 = vunpack.c.l.b16 %v493_v53  ;;  %v737_v57 = vunpack.c.h.b16 %v493_v53 }
  0x32   : > { %v3536_v1 = vld [vmem:[#allocation3 + $0x240] sm:$0xf]  ;;  %v4588_v2 = vld [vmem:[#allocation3 + $0x24c] sm:$0xf0]  ;;  %v3409_v6 = vor.u32 %v4556_v0, %v3408_v62  ;;  %1918 = vmatpush.bf16.msra.mxu3 %v3681_v63  ;;  %v3349_v63 = vor.u32 %v4538_v51, %v3346_v52 }
  0x33   : > { %v3664_v3 = vld [vmem:[#allocation3 + $0x340] sm:$0xf]  ;;  %v4620_v4 = vld [vmem:[#allocation3 + $0x34c] sm:$0xf0]  ;;  %v3537_v7 = vor.u32 %v4588_v2, %v3536_v1  ;;  %1880 = vmatpush.bf16.msra.mxu0 %v3281_v5  ;;  %v5154_v2 = vpack.c.b16 %v736_v56, %v736_v56  ;;  %v3330_v5 = vld [vmem:[#allocation3 + $0xb0] sm:$0xf0] }
  0x34   : > { %v3264_v8 = vld [vmem:[#allocation3 + $0x20] sm:$0xf]  ;;  %v4520_v9 = vld [vmem:[#allocation3 + $0x2c] sm:$0xf0]  ;;  %v3665_v11 = vor.u32 %v4620_v4, %v3664_v3  ;;  %1893 = vmatpush.bf16.msra.mxu1 %v3409_v6  ;;  %v4534_v4 = vld [vmem:[#allocation3 + $0xa4] sm:$0xf] }
  0x35   : > { %v3392_v10 = vld [vmem:[#allocation3 + $0x120] sm:$0xf]  ;;  %v4552_v12 = vld [vmem:[#allocation3 + $0x12c] sm:$0xf0]  ;;  %v3265_v17 = vor.u32 %v4520_v9, %v3264_v8  ;;  %1906 = vmatpush.bf16.msra.mxu2 %v3537_v7 }
  0x36   : > { %v3520_v13 = vld [vmem:[#allocation3 + $0x220] sm:$0xf]  ;;  %v4584_v14 = vld [vmem:[#allocation3 + $0x22c] sm:$0xf0]  ;;  %v3393_v20 = vor.u32 %v4552_v12, %v3392_v10  ;;  %1919 = vmatpush.bf16.msra.mxu3 %v3665_v11  ;;  %v5158_v10 = vpack.c.b16 %v737_v57, %v737_v57  ;;  %v4518_v57 = vld [vmem:[#allocation3 + $0x24] sm:$0xf] }
  0x37   : > { %v3648_v15 = vld [vmem:[#allocation3 + $0x320] sm:$0xf]  ;;  %v4616_v16 = vld [vmem:[#allocation3 + $0x32c] sm:$0xf0]  ;;  %v3521_v21 = vor.u32 %v4584_v14, %v3520_v13  ;;  %1881 = vmatpush.bf16.msra.mxu0 %v3265_v17  ;;  %v3333_v17 = vor.u32 %v4534_v4, %v3330_v5  ;;  %v495_v5 = vld [vmem:[%s5151_s12 + $0x18] sm:$0xf] }
  0x38   : > { %v3248_v18 = vld [vmem:[#allocation3] sm:$0xf]  ;;  %v4516_v19 = vld [vmem:[#allocation3 + $0xc] sm:$0xf0]  ;;  %v3649_v25 = vor.u32 %v4616_v16, %v3648_v15  ;;  %1894 = vmatpush.bf16.msra.mxu1 %v3393_v20 }
  0x39   : > { %v3376_v22 = vld [vmem:[#allocation3 + $0x100] sm:$0xf]  ;;  %v4548_v23 = vld [vmem:[#allocation3 + $0x10c] sm:$0xf0]  ;;  %v3249_v32 = vor.u32 %v4516_v19, %v3248_v18  ;;  %1907 = vmatpush.bf16.msra.mxu2 %v3521_v21  ;;  %v4530_v21 = vld [vmem:[#allocation3 + $0x84] sm:$0xf] }
  0x3a   : > { %v3504_v24 = vld [vmem:[#allocation3 + $0x200] sm:$0xf]  ;;  %v4580_v26 = vld [vmem:[#allocation3 + $0x20c] sm:$0xf0]  ;;  %v3377_v36 = vor.u32 %v4548_v23, %v3376_v22  ;;  %1920 = vmatpush.bf16.msra.mxu3 %v3649_v25  ;;  %v3314_v22 = vld [vmem:[#allocation3 + $0x90] sm:$0xf0] }
  0x3b   : > { %v3632_v27 = vld [vmem:[#allocation3 + $0x300] sm:$0xf]  ;;  %v4612_v28 = vld [vmem:[#allocation3 + $0x30c] sm:$0xf0]  ;;  %v3505_v37 = vor.u32 %v4580_v26, %v3504_v24  ;;  %1882 = vmatpush.bf16.msra.mxu0 %v3249_v32 }
  0x3c   : > { %v3872_v29 = vld [vmem:[#allocation3 + $0x4e0] sm:$0xf]  ;;  %v4672_v30 = vld [vmem:[#allocation3 + $0x4ec] sm:$0xf0]  ;;  %v3633_v40 = vor.u32 %v4612_v28, %v3632_v27  ;;  %1895 = vmatpush.bf16.msra.mxu1 %v3377_v36 }
  0x3d   : > { %v4000_v31 = vld [vmem:[#allocation3 + $0x5e0] sm:$0xf]  ;;  %v4704_v33 = vld [vmem:[#allocation3 + $0x5ec] sm:$0xf0]  ;;  %v3873_v41 = vor.u32 %v4672_v30, %v3872_v29  ;;  %1908 = vmatpush.bf16.msra.mxu2 %v3505_v37  ;;  %v3317_v29 = vor.u32 %v4530_v21, %v3314_v22 }
  0x3e   : > { %v4128_v34 = vld [vmem:[#allocation3 + $0x6e0] sm:$0xf]  ;;  %v4736_v35 = vld [vmem:[#allocation3 + $0x6ec] sm:$0xf0]  ;;  %v4001_v42 = vor.u32 %v4704_v33, %v4000_v31  ;;  %1921 = vmatpush.bf16.msra.mxu3 %v3633_v40  ;;  %v4526_v33 = vld [vmem:[#allocation3 + $0x64] sm:$0xf] }
  0x3f   : > { %v4129_v43 = vor.u32 %v4736_v35, %v4128_v34  ;;  %v3856_v44 = vld [vmem:[#allocation3 + $0x4c0] sm:$0xf]  ;;  %v4668_v45 = vld [vmem:[#allocation3 + $0x4cc] sm:$0xf0]  ;;  %1927 = vmatpush.bf16.msrb.mxu0 %v3873_v41  ;;  %v3298_v34 = vld [vmem:[#allocation3 + $0x70] sm:$0xf0] }
  0x40   : > { %v3984_v46 = vld [vmem:[#allocation3 + $0x5c0] sm:$0xf]  ;;  %v4700_v48 = vld [vmem:[#allocation3 + $0x5cc] sm:$0xf0]  ;;  %v3857_v54 = vor.u32 %v4668_v45, %v3856_v44  ;;  %1940 = vmatpush.bf16.msrb.mxu1 %v4001_v42  ;;  %1909 = vmatmul.bf16.vlgmr.msra.gmra.mxu2 %v5154_v2  ;;  %v3301_v41 = vor.u32 %v4526_v33, %v3298_v34  ;;  %v4522_v45 = vld [vmem:[#allocation3 + $0x44] sm:$0xf] }
  0x41   : > { %v4112_v49 = vld [vmem:[#allocation3 + $0x6c0] sm:$0xf]  ;;  %v4732_v50 = vld [vmem:[#allocation3 + $0x6cc] sm:$0xf0]  ;;  %1953 = vmatpush.bf16.msrb.mxu2 %v4129_v43  ;;  %v3985_v58 = vor.u32 %v4700_v48, %v3984_v46  ;;  %1922 = vmatmul.bf16.vlgmr.msra.gmra.mxu3 %v5158_v10  ;;  %v3282_v46 = vld [vmem:[#allocation3 + $0x50] sm:$0xf0] }
  0x42   : > { %v3840_v55 = vld [vmem:[#allocation3 + $0x4a0] sm:$0xf]  ;;  %v4113_v59 = vor.u32 %v4732_v50, %v4112_v49  ;;  %v4664_v60 = vld [vmem:[#allocation3 + $0x4ac] sm:$0xf0]  ;;  %1966 = vmatpush.bf16.msrb.mxu3 %v3365_v47  ;;  %v3285_v53 = vor.u32 %v4522_v45, %v3282_v46  ;;  %v4602_v33 = vld [vmem:[#allocation3 + $0x2c4] sm:$0xf] }
  0x43   : > { %v3968_v61 = vld [vmem:[#allocation3 + $0x5a0] sm:$0xf]  ;;  %v4696_v62 = vld [vmem:[#allocation3 + $0x5ac] sm:$0xf0]  ;;  %1928 = vmatpush.bf16.msrb.mxu0 %v3857_v54  ;;  %v3841_v8 = vor.u32 %v4664_v60, %v3840_v55  ;;  %v4566_v46 = vld [vmem:[#allocation3 + $0x1a4] sm:$0xf] }
  0x44   : > { %v4096_v0 = vld [vmem:[#allocation3 + $0x6a0] sm:$0xf]  ;;  %v4728_v1 = vld [vmem:[#allocation3 + $0x6ac] sm:$0xf0]  ;;  %v3969_v9 = vor.u32 %v4696_v62, %v3968_v61  ;;  %1941 = vmatpush.bf16.msrb.mxu1 %v3985_v58  ;;  %v3266_v58 = vld [vmem:[#allocation3 + $0x30] sm:$0xf0] }
  0x45   : > { %v492_v3 = vld [vmem:[%s5151_s12] sm:$0xff]  ;;  %1954 = vmatpush.bf16.msrb.mxu2 %v4113_v59  ;;  %v4097_v11 = vor.u32 %v4728_v1, %v4096_v0  ;;  %v4660_v13 = vld [vmem:[#allocation3 + $0x48c] sm:$0xf0] }
  0x46   : > { %v734_v6 = vunpack.c.l.b16 %v492_v3  ;;  %v735_v7 = vunpack.c.h.b16 %v492_v3  ;;  %v3824_v12 = vld [vmem:[#allocation3 + $0x480] sm:$0xf]  ;;  %1967 = vmatpush.bf16.msrb.mxu3 %v3349_v63  ;;  %v4692_v18 = vld [vmem:[#allocation3 + $0x58c] sm:$0xf0] }
  0x47   : > { %v3952_v14 = vld [vmem:[#allocation3 + $0x580] sm:$0xf]  ;;  %v4724_v20 = vld [vmem:[#allocation3 + $0x68c] sm:$0xf0]  ;;  %1929 = vmatpush.bf16.msrb.mxu0 %v3841_v8  ;;  %v3825_v23 = vor.u32 %v4660_v13, %v3824_v12  ;;  %v3250_v8 = vld [vmem:[#allocation3 + $0x10] sm:$0xf0] }
  0x48   : > { %v5160_v15 = vpack.c.b16 %v734_v6, %v734_v6  ;;  %v5162_v16 = vpack.c.b16 %v735_v7, %v735_v7  ;;  %v4080_v19 = vld [vmem:[#allocation3 + $0x680] sm:$0xf]  ;;  %1942 = vmatpush.bf16.msrb.mxu1 %v3969_v9  ;;  %v3953_v24 = vor.u32 %v4692_v18, %v3952_v14  ;;  %v4656_v27 = vld [vmem:[#allocation3 + $0x46c] sm:$0xf0]  ;;  %v3269_v6 = vor.u32 %v4518_v57, %v3266_v58  ;;  %v4514_v7 = vld [vmem:[#allocation3 + $0x4] sm:$0xf] }
  0x49   : > { %1955 = vmatpush.bf16.msrb.mxu2 %v4097_v11  ;;  %v4081_v25 = vor.u32 %v4724_v20, %v4080_v19  ;;  %v3808_v26 = vld [vmem:[#allocation3 + $0x460] sm:$0xf]  ;;  %v4688_v30 = vld [vmem:[#allocation3 + $0x56c] sm:$0xf0]  ;;  %v4574_v11 = vld [vmem:[#allocation3 + $0x1e4] sm:$0xf]  ;;  %v740_v20 = vunpack.c.l.b16 %v495_v5 }
  0x4a   : > { %1883 = vmatmul.bf16.vlgmr.msra.gmra.mxu0 %v5160_v15  ;;  %1896 = vmatmul.bf16.vlgmr.msra.gmra.mxu1 %v5162_v16  ;;  %v3936_v28 = vld [vmem:[#allocation3 + $0x560] sm:$0xf]  ;;  %v4720_v32 = vld [vmem:[#allocation3 + $0x66c] sm:$0xf0]  ;;  %v3809_v35 = vor.u32 %v4656_v27, %v3808_v26  ;;  %v3490_v12 = vld [vmem:[#allocation3 + $0x1f0] sm:$0xf0]  ;;  %v3253_v27 = vor.u32 %v4514_v7, %v3250_v8 }
  0x4b   : > { %1968 = vmatpush.bf16.msrb.mxu3 %v3333_v17  ;;  %v4064_v31 = vld [vmem:[#allocation3 + $0x660] sm:$0xf]  ;;  %1930 = vmatpush.bf16.msrb.mxu0 %v3825_v23  ;;  %v3937_v36 = vor.u32 %v4688_v30, %v3936_v28  ;;  %v4652_v39 = vld [vmem:[#allocation3 + $0x44c] sm:$0xf0]  ;;  %v4606_v13 = vld [vmem:[#allocation3 + $0x2e4] sm:$0xf]  ;;  %v3493_v28 = vor.u32 %v4574_v11, %v3490_v12 }
  0x4c   : > { %1943 = vmatpush.bf16.msrb.mxu1 %v3953_v24  ;;  %v4065_v37 = vor.u32 %v4720_v32, %v4064_v31  ;;  %v3792_v38 = vld [vmem:[#allocation3 + $0x440] sm:$0xf]  ;;  %v4684_v42 = vld [vmem:[#allocation3 + $0x54c] sm:$0xf0]  ;;  %v3618_v17 = vld [vmem:[#allocation3 + $0x2f0] sm:$0xf0] }
  0x4d   : > { %1956 = vmatpush.bf16.msrb.mxu2 %v4081_v25  ;;  %v3920_v40 = vld [vmem:[#allocation3 + $0x540] sm:$0xf]  ;;  %v4716_v44 = vld [vmem:[#allocation3 + $0x64c] sm:$0xf0]  ;;  %v3793_v47 = vor.u32 %v4652_v39, %v3792_v38  ;;  %v4638_v18 = vld [vmem:[#allocation3 + $0x3e4] sm:$0xf] }
  0x4e   : > { %v4048_v43 = vld [vmem:[#allocation3 + $0x640] sm:$0xf]  ;;  %v3921_v48 = vor.u32 %v4684_v42, %v3920_v40  ;;  %v4648_v51 = vld [vmem:[#allocation3 + $0x42c] sm:$0xf0]  ;;  %v3746_v19 = vld [vmem:[#allocation3 + $0x3f0] sm:$0xf0] }
  0x4f   : > { %1969 = vmatpush.bf16.msrb.mxu3 %v3317_v29  ;;  %1931 = vmatpush.bf16.msrb.mxu0 %v3809_v35  ;;  %v4049_v49 = vor.u32 %v4716_v44, %v4048_v43  ;;  %v3776_v50 = vld [vmem:[#allocation3 + $0x420] sm:$0xf]  ;;  %v4680_v54 = vld [vmem:[#allocation3 + $0x52c] sm:$0xf0]  ;;  %v4670_v23 = vld [vmem:[#allocation3 + $0x4e4] sm:$0xf]  ;;  %v3621_v29 = vor.u32 %v4606_v13, %v3618_v17  ;;  %v3749_v30 = vor.u32 %v4638_v18, %v3746_v19 }
  0x50   : > { %1944 = vmatpush.bf16.msrb.mxu1 %v3937_v36  ;;  %v3904_v52 = vld [vmem:[#allocation3 + $0x520] sm:$0xf]  ;;  %v4712_v56 = vld [vmem:[#allocation3 + $0x62c] sm:$0xf0]  ;;  %v3777_v60 = vor.u32 %v4648_v51, %v3776_v50  ;;  %v3874_v24 = vld [vmem:[#allocation3 + $0x4f0] sm:$0xf0]  ;;  %v5169_v35 = vpack.c.b16 %v740_v20, %v740_v20 }
  0x51   : > { %1957 = vmatpush.bf16.msrb.mxu2 %v4065_v37  ;;  %v4032_v55 = vld [vmem:[#allocation3 + $0x620] sm:$0xf]  ;;  %v4644_v61 = vld [vmem:[#allocation3 + $0x40c] sm:$0xf0]  ;;  %v3905_v0 = vor.u32 %v4680_v54, %v3904_v52  ;;  %v4570_v31 = vld [vmem:[#allocation3 + $0x1c4] sm:$0xf]  ;;  %v3877_v34 = vor.u32 %v4670_v23, %v3874_v24 }
  0x52   : > { %v3760_v59 = vld [vmem:[#allocation3 + $0x400] sm:$0xf]  ;;  %v4676_v63 = vld [vmem:[#allocation3 + $0x50c] sm:$0xf0]  ;;  %v4033_v1 = vor.u32 %v4712_v56, %v4032_v55  ;;  %v3474_v32 = vld [vmem:[#allocation3 + $0x1d0] sm:$0xf0] }
  0x53   : > { %1970 = vmatpush.bf16.msrb.mxu3 %v3301_v41  ;;  %1932 = vmatpush.bf16.msrb.mxu0 %v3793_v47  ;;  %v3888_v62 = vld [vmem:[#allocation3 + $0x500] sm:$0xf]  ;;  %v4708_v4 = vld [vmem:[#allocation3 + $0x60c] sm:$0xf0]  ;;  %v3761_v14 = vor.u32 %v4644_v61, %v3760_v59  ;;  %v3602_v36 = vld [vmem:[#allocation3 + $0x2d0] sm:$0xf0]  ;;  %v3477_v43 = vor.u32 %v4570_v31, %v3474_v32 }
  0x54   : > { %1945 = vmatpush.bf16.msrb.mxu1 %v3921_v48  ;;  %v4016_v3 = vld [vmem:[#allocation3 + $0x600] sm:$0xf]  ;;  %v494_v9 = vld [vmem:[%s5151_s12 + $0x10] sm:$0xff]  ;;  %v3889_v21 = vor.u32 %v4676_v63, %v3888_v62  ;;  %v4634_v37 = vld [vmem:[#allocation3 + $0x3c4] sm:$0xf]  ;;  %v3605_v44 = vor.u32 %v4602_v33, %v3602_v36 }
  0x55   : > { %1958 = vmatpush.bf16.msrb.mxu2 %v4049_v49  ;;  %v4017_v22 = vor.u32 %v4708_v4, %v4016_v3  ;;  %v738_v25 = vunpack.c.l.b16 %v494_v9  ;;  %v739_v26 = vunpack.c.h.b16 %v494_v9  ;;  %v3730_v38 = vld [vmem:[#allocation3 + $0x3d0] sm:$0xf0]  ;;  %v4666_v40 = vld [vmem:[#allocation3 + $0x4c4] sm:$0xf] }
  0x56   : > { %v3858_v41 = vld [vmem:[#allocation3 + $0x4d0] sm:$0xf0]  ;;  %v3733_v45 = vor.u32 %v4634_v37, %v3730_v38  ;;  %v4598_v48 = vld [vmem:[#allocation3 + $0x2a4] sm:$0xf] }
  0x57   : > { %1971 = vmatpush.bf16.msrb.mxu3 %v3285_v53  ;;  %1933 = vmatpush.bf16.msrb.mxu0 %v3777_v60  ;;  %v5171_v39 = vpack.c.b16 %v738_v25, %v738_v25  ;;  %v5173_v42 = vpack.c.b16 %v739_v26, %v739_v26  ;;  %v3458_v47 = vld [vmem:[#allocation3 + $0x1b0] sm:$0xf0]  ;;  %v3861_v49 = vor.u32 %v4666_v40, %v3858_v41  ;;  %v4630_v51 = vld [vmem:[#allocation3 + $0x3a4] sm:$0xf] }
  0x58   : > { %1946 = vmatpush.bf16.msrb.mxu1 %v3905_v0  ;;  %v3586_v50 = vld [vmem:[#allocation3 + $0x2b0] sm:$0xf0]  ;;  %v4662_v53 = vld [vmem:[#allocation3 + $0x4a4] sm:$0xf]  ;;  %v3461_v55 = vor.u32 %v4566_v46, %v3458_v47 }
  0x59   : > { %1959 = vmatpush.bf16.msrb.mxu2 %v4033_v1  ;;  %v3714_v52 = vld [vmem:[#allocation3 + $0x3b0] sm:$0xf0]  ;;  %v3589_v56 = vor.u32 %v4598_v48, %v3586_v50  ;;  %v4562_v58 = vld [vmem:[#allocation3 + $0x184] sm:$0xf] }
  0x5a   : > { %v3842_v54 = vld [vmem:[#allocation3 + $0x4b0] sm:$0xf0]  ;;  %v3717_v57 = vor.u32 %v4630_v51, %v3714_v52  ;;  %v4594_v60 = vld [vmem:[#allocation3 + $0x284] sm:$0xf] }
  0x5b   : > { %1972 = vmatpush.bf16.msrb.mxu3 %v3269_v6  ;;  %1934 = vmatpush.bf16.msrb.mxu0 %v3761_v14  ;;  %v3442_v59 = vld [vmem:[#allocation3 + $0x190] sm:$0xf0]  ;;  %v3845_v61 = vor.u32 %v4662_v53, %v3842_v54  ;;  %v4626_v63 = vld [vmem:[#allocation3 + $0x384] sm:$0xf] }
  0x5c   : > { %1947 = vmatpush.bf16.msrb.mxu1 %v3889_v21  ;;  %v3570_v62 = vld [vmem:[#allocation3 + $0x290] sm:$0xf0]  ;;  %v4658_v1 = vld [vmem:[#allocation3 + $0x484] sm:$0xf]  ;;  %v3445_v4 = vor.u32 %v4562_v58, %v3442_v59 }
  0x5d   : > { %1960 = vmatpush.bf16.msrb.mxu2 %v4017_v22  ;;  %v3698_v0 = vld [vmem:[#allocation3 + $0x390] sm:$0xf0]  ;;  %v3573_v5 = vor.u32 %v4594_v60, %v3570_v62  ;;  %v4558_v7 = vld [vmem:[#allocation3 + $0x164] sm:$0xf] }
  0x5e   : > { %1935 = vmatmul.bf16.vlgmr.msrb.gmra.mxu0 %v5171_v39  ;;  %v3826_v3 = vld [vmem:[#allocation3 + $0x490] sm:$0xf0]  ;;  %v3701_v6 = vor.u32 %v4626_v63, %v3698_v0  ;;  %v4590_v9 = vld [vmem:[#allocation3 + $0x264] sm:$0xf]  ;;  %v3368_v63 = vld [vmem:[#allocation3 + $0xe8] sm:$0xf] }
  0x5f   : > { %1973 = vmatpush.bf16.msrb.mxu3 %v3253_v27  ;;  %1979 = vmatpush.bf16.msra.mxu0 %v3493_v28  ;;  %v3426_v8 = vld [vmem:[#allocation3 + $0x170] sm:$0xf0]  ;;  %v3829_v11 = vor.u32 %v4658_v1, %v3826_v3  ;;  %v4622_v13 = vld [vmem:[#allocation3 + $0x364] sm:$0xf]  ;;  %v4545_v0 = vld [vmem:[#allocation3 + $0xf4] sm:$0xf0] }
  0x60   : > { %1992 = vmatpush.bf16.msra.mxu1 %v3621_v29  ;;  %1961 = vmatmul.bf16.vlgmr.msrb.gmra.mxu2 %v5169_v35  ;;  %v3554_v12 = vld [vmem:[#allocation3 + $0x270] sm:$0xf0]  ;;  %v4654_v17 = vld [vmem:[#allocation3 + $0x464] sm:$0xf]  ;;  %v3429_v19 = vor.u32 %v4558_v7, %v3426_v8 }
  0x61   : > { %2005 = vmatpush.bf16.msra.mxu2 %v3749_v30  ;;  %1948 = vmatmul.bf16.vlgmr.msrb.gmra.mxu1 %v5173_v42  ;;  %v3682_v14 = vld [vmem:[#allocation3 + $0x370] sm:$0xf0]  ;;  %v3557_v20 = vor.u32 %v4590_v9, %v3554_v12  ;;  %v4554_v22 = vld [vmem:[#allocation3 + $0x144] sm:$0xf]  ;;  %v3369_v9 = vor.u32 %v4545_v0, %v3368_v63 }
  0x62   : > { %1974 = vmatmul.bf16.vlgmr.msrb.gmra.mxu3 %v5160_v15  ;;  %v3810_v18 = vld [vmem:[#allocation3 + $0x470] sm:$0xf0]  ;;  %v3685_v21 = vor.u32 %v4622_v13, %v3682_v14  ;;  %v4586_v24 = vld [vmem:[#allocation3 + $0x244] sm:$0xf] }
  0x63   : > { %2018 = vmatpush.bf16.msra.mxu3 %v3877_v34  ;;  %1980 = vmatpush.bf16.msra.mxu0 %v3477_v43  ;;  %v3410_v23 = vld [vmem:[#allocation3 + $0x150] sm:$0xf0]  ;;  %v3813_v25 = vor.u32 %v4654_v17, %v3810_v18  ;;  %v4618_v27 = vld [vmem:[#allocation3 + $0x344] sm:$0xf]  ;;  %v3352_v18 = vld [vmem:[#allocation3 + $0xc8] sm:$0xf] }
  0x64   : > { %1993 = vmatpush.bf16.msra.mxu1 %v3605_v44  ;;  %v3538_v26 = vld [vmem:[#allocation3 + $0x250] sm:$0xf0]  ;;  %v4650_v29 = vld [vmem:[#allocation3 + $0x444] sm:$0xf]  ;;  %v3413_v31 = vor.u32 %v4554_v22, %v3410_v23 }
  0x65   : > { %2006 = vmatpush.bf16.msra.mxu2 %v3733_v45  ;;  %v3666_v28 = vld [vmem:[#allocation3 + $0x350] sm:$0xf0]  ;;  %v4550_v32 = vld [vmem:[#allocation3 + $0x124] sm:$0xf]  ;;  %v3541_v34 = vor.u32 %v4586_v24, %v3538_v26 }
  0x66   : > { %v3794_v30 = vld [vmem:[#allocation3 + $0x450] sm:$0xf0]  ;;  %v3669_v36 = vor.u32 %v4618_v27, %v3666_v28  ;;  %v4582_v37 = vld [vmem:[#allocation3 + $0x224] sm:$0xf] }
  0x67   : > { %2019 = vmatpush.bf16.msra.mxu3 %v3861_v49  ;;  %1981 = vmatpush.bf16.msra.mxu0 %v3461_v55  ;;  %v3394_v33 = vld [vmem:[#allocation3 + $0x130] sm:$0xf0]  ;;  %v4614_v40 = vld [vmem:[#allocation3 + $0x324] sm:$0xf]  ;;  %v3797_v41 = vor.u32 %v4650_v29, %v3794_v30  ;;  %v3336_v30 = vld [vmem:[#allocation3 + $0xa8] sm:$0xf] }
  0x68   : > { %1994 = vmatpush.bf16.msra.mxu1 %v3589_v56  ;;  %v3522_v38 = vld [vmem:[#allocation3 + $0x230] sm:$0xf0]  ;;  %v4646_v44 = vld [vmem:[#allocation3 + $0x424] sm:$0xf]  ;;  %v3397_v46 = vor.u32 %v4550_v32, %v3394_v33  ;;  %v3464_v32 = vld [vmem:[#allocation3 + $0x1a8] sm:$0xf] }
  0x69   : > { %2007 = vmatpush.bf16.msra.mxu2 %v3717_v57  ;;  %v3650_v43 = vld [vmem:[#allocation3 + $0x330] sm:$0xf0]  ;;  %v4546_v47 = vld [vmem:[#allocation3 + $0x104] sm:$0xf]  ;;  %v3525_v49 = vor.u32 %v4582_v37, %v3522_v38  ;;  %v4569_v33 = vld [vmem:[#allocation3 + $0x1b4] sm:$0xf0] }
  0x6a   : > { %v3778_v45 = vld [vmem:[#allocation3 + $0x430] sm:$0xf0]  ;;  %v3653_v50 = vor.u32 %v4614_v40, %v3650_v43  ;;  %v4578_v51 = vld [vmem:[#allocation3 + $0x204] sm:$0xf]  ;;  %v3465_v43 = vor.u32 %v4569_v33, %v3464_v32  ;;  %v3256_v32 = vld [vmem:[#allocation3 + $0x8] sm:$0xf] }
  0x6b   : > { %2020 = vmatpush.bf16.msra.mxu3 %v3845_v61  ;;  %1982 = vmatpush.bf16.msra.mxu0 %v3445_v4  ;;  %v3378_v48 = vld [vmem:[#allocation3 + $0x110] sm:$0xf0]  ;;  %v4610_v53 = vld [vmem:[#allocation3 + $0x304] sm:$0xf]  ;;  %v3781_v54 = vor.u32 %v4646_v44, %v3778_v45  ;;  %v3496_v4 = vld [vmem:[#allocation3 + $0x1e8] sm:$0xf] }
  0x6c   : > { %1995 = vmatpush.bf16.msra.mxu1 %v3573_v5  ;;  %v3506_v52 = vld [vmem:[#allocation3 + $0x210] sm:$0xf0]  ;;  %v4642_v56 = vld [vmem:[#allocation3 + $0x404] sm:$0xf]  ;;  %v3381_v61 = vor.u32 %v4546_v47, %v3378_v48  ;;  %v4577_v5 = vld [vmem:[#allocation3 + $0x1f4] sm:$0xf0] }
  0x6d   : > { %2008 = vmatpush.bf16.msra.mxu2 %v3701_v6  ;;  %v3634_v55 = vld [vmem:[#allocation3 + $0x310] sm:$0xf0]  ;;  %v4702_v58 = vld [vmem:[#allocation3 + $0x5e4] sm:$0xf]  ;;  %v3509_v1 = vor.u32 %v4578_v51, %v3506_v52  ;;  %v3497_v14 = vor.u32 %v4577_v5, %v3496_v4  ;;  %v3320_v45 = vld [vmem:[#allocation3 + $0x88] sm:$0xf] }
  0x6e   : > { %v3762_v57 = vld [vmem:[#allocation3 + $0x410] sm:$0xf0]  ;;  %v4734_v60 = vld [vmem:[#allocation3 + $0x6e4] sm:$0xf]  ;;  %v3637_v3 = vor.u32 %v4610_v53, %v3634_v55  ;;  %v3448_v47 = vld [vmem:[#allocation3 + $0x188] sm:$0xf] }
  0x6f   : > { %2021 = vmatpush.bf16.msra.mxu3 %v3829_v11  ;;  %1983 = vmatpush.bf16.msra.mxu0 %v3429_v19  ;;  %v4002_v59 = vld [vmem:[#allocation3 + $0x5f0] sm:$0xf0]  ;;  %v3765_v6 = vor.u32 %v4642_v56, %v3762_v57  ;;  %v4698_v11 = vld [vmem:[#allocation3 + $0x5c4] sm:$0xf]  ;;  %v4541_v19 = vld [vmem:[#allocation3 + $0xd4] sm:$0xf0] }
  0x70   : > { %1996 = vmatpush.bf16.msra.mxu1 %v3557_v20  ;;  %v4130_v62 = vld [vmem:[#allocation3 + $0x6f0] sm:$0xf0]  ;;  %v4005_v7 = vor.u32 %v4702_v58, %v4002_v59  ;;  %v4730_v13 = vld [vmem:[#allocation3 + $0x6c4] sm:$0xf]  ;;  %v3480_v20 = vld [vmem:[#allocation3 + $0x1c8] sm:$0xf]  ;;  %v3353_v24 = vor.u32 %v4541_v19, %v3352_v18 }
  0x71   : > { %2009 = vmatpush.bf16.msra.mxu2 %v3685_v21  ;;  %v4133_v8 = vor.u32 %v4734_v60, %v4130_v62  ;;  %v3986_v12 = vld [vmem:[#allocation3 + $0x5d0] sm:$0xf0]  ;;  %v4573_v21 = vld [vmem:[#allocation3 + $0x1d4] sm:$0xf0]  ;;  %v4726_v27 = vld [vmem:[#allocation3 + $0x6a4] sm:$0xf] }
  0x72   : > { %v4114_v17 = vld [vmem:[#allocation3 + $0x6d0] sm:$0xf0]  ;;  %v3989_v22 = vor.u32 %v4698_v11, %v3986_v12  ;;  %v3481_v28 = vor.u32 %v4573_v21, %v3480_v20  ;;  %v4690_v38 = vld [vmem:[#allocation3 + $0x584] sm:$0xf]  ;;  %v4565_v48 = vld [vmem:[#allocation3 + $0x194] sm:$0xf0] }
  0x73   : > { %2022 = vmatpush.bf16.msra.mxu3 %v3813_v25  ;;  %1984 = vmatpush.bf16.msra.mxu0 %v3413_v31  ;;  %v4117_v23 = vor.u32 %v4730_v13, %v4114_v17  ;;  %v4694_v25 = vld [vmem:[#allocation3 + $0x5a4] sm:$0xf]  ;;  %v3970_v26 = vld [vmem:[#allocation3 + $0x5b0] sm:$0xf0]  ;;  %v4537_v31 = vld [vmem:[#allocation3 + $0xb4] sm:$0xf0]  ;;  %v3449_v55 = vor.u32 %v4565_v48, %v3448_v47 }
  0x74   : > { %1997 = vmatpush.bf16.msra.mxu1 %v3541_v34  ;;  %v4098_v29 = vld [vmem:[#allocation3 + $0x6b0] sm:$0xf0]  ;;  %v3973_v34 = vor.u32 %v4694_v25, %v3970_v26  ;;  %v3337_v37 = vor.u32 %v4537_v31, %v3336_v30  ;;  %v4686_v52 = vld [vmem:[#allocation3 + $0x564] sm:$0xf]  ;;  %v3304_v57 = vld [vmem:[#allocation3 + $0x68] sm:$0xf] }
  0x75   : > { %2010 = vmatpush.bf16.msra.mxu2 %v3669_v36  ;;  %v4101_v36 = vor.u32 %v4726_v27, %v4098_v29  ;;  %v3954_v40 = vld [vmem:[#allocation3 + $0x590] sm:$0xf0]  ;;  %v4529_v58 = vld [vmem:[#allocation3 + $0x74] sm:$0xf0]  ;;  %v3432_v59 = vld [vmem:[#allocation3 + $0x168] sm:$0xf] }
  0x76   : > { %v4082_v44 = vld [vmem:[#allocation3 + $0x690] sm:$0xf0]  ;;  %v4561_v60 = vld [vmem:[#allocation3 + $0x174] sm:$0xf0]  ;;  %v3305_v63 = vor.u32 %v4529_v58, %v3304_v57  ;;  %v4682_v0 = vld [vmem:[#allocation3 + $0x544] sm:$0xf] }
  0x77   : > { %2023 = vmatpush.bf16.msra.mxu3 %v3797_v41  ;;  %1985 = vmatpush.bf16.msra.mxu0 %v3397_v46  ;;  %v4722_v41 = vld [vmem:[#allocation3 + $0x684] sm:$0xf]  ;;  %v4533_v46 = vld [vmem:[#allocation3 + $0x94] sm:$0xf0]  ;;  %v3938_v53 = vld [vmem:[#allocation3 + $0x570] sm:$0xf0]  ;;  %v3433_v4 = vor.u32 %v4561_v60, %v3432_v59 }
  0x78   : > { %1998 = vmatpush.bf16.msra.mxu1 %v3525_v49  ;;  %v3957_v49 = vor.u32 %v4690_v38, %v3954_v40  ;;  %v3321_v51 = vor.u32 %v4533_v46, %v3320_v45  ;;  %v4066_v56 = vld [vmem:[#allocation3 + $0x670] sm:$0xf0]  ;;  %v4710_v18 = vld [vmem:[#allocation3 + $0x624] sm:$0xf]  ;;  %v3272_v21 = vld [vmem:[#allocation3 + $0x28] sm:$0xf] }
  0x79   : > { %2011 = vmatpush.bf16.msra.mxu2 %v3653_v50  ;;  %v4085_v50 = vor.u32 %v4722_v41, %v4082_v44  ;;  %v4050_v5 = vld [vmem:[#allocation3 + $0x650] sm:$0xf0]  ;;  %v4674_v26 = vld [vmem:[#allocation3 + $0x504] sm:$0xf]  ;;  %v3624_v38 = vld [vmem:[#allocation3 + $0x2e8] sm:$0xf] }
  0x7a   : > { %v3906_v17 = vld [vmem:[#allocation3 + $0x530] sm:$0xf0]  ;;  %v4706_v30 = vld [vmem:[#allocation3 + $0x604] sm:$0xf]  ;;  %v4609_v40 = vld [vmem:[#allocation3 + $0x2f4] sm:$0xf0] }
  0x7b   : > { %2024 = vmatpush.bf16.msra.mxu3 %v3781_v54  ;;  %1986 = vmatpush.bf16.msra.mxu0 %v3381_v61  ;;  %v4718_v54 = vld [vmem:[#allocation3 + $0x664] sm:$0xf]  ;;  %v3941_v61 = vor.u32 %v4686_v52, %v3938_v53  ;;  %v4034_v20 = vld [vmem:[#allocation3 + $0x630] sm:$0xf0]  ;;  %v3752_v41 = vld [vmem:[#allocation3 + $0x3e8] sm:$0xf]  ;;  %v3625_v52 = vor.u32 %v4609_v40, %v3624_v38 }
  0x7c   : > { %1999 = vmatpush.bf16.msra.mxu1 %v3509_v1  ;;  %v4069_v62 = vor.u32 %v4718_v54, %v4066_v56  ;;  %v3922_v1 = vld [vmem:[#allocation3 + $0x550] sm:$0xf0]  ;;  %v4641_v44 = vld [vmem:[#allocation3 + $0x3f4] sm:$0xf0]  ;;  %v3880_v45 = vld [vmem:[#allocation3 + $0x4e8] sm:$0xf] }
  0x7d   : > { %2012 = vmatpush.bf16.msra.mxu2 %v3637_v3  ;;  %v4714_v3 = vld [vmem:[#allocation3 + $0x644] sm:$0xf]  ;;  %v3925_v11 = vor.u32 %v4682_v0, %v3922_v1  ;;  %v3890_v27 = vld [vmem:[#allocation3 + $0x510] sm:$0xf0]  ;;  %v4673_v46 = vld [vmem:[#allocation3 + $0x4f4] sm:$0xf0]  ;;  %v3753_v53 = vor.u32 %v4641_v44, %v3752_v41 }
  0x7e   : > { %1987 = vmatmul.bf16.vlgmr.msra.gmra.mxu0 %v5162_v16  ;;  %v4053_v12 = vor.u32 %v4714_v3, %v4050_v5  ;;  %v4018_v31 = vld [vmem:[#allocation3 + $0x610] sm:$0xf0]  ;;  %v3881_v54 = vor.u32 %v4673_v46, %v3880_v45  ;;  %v4605_v56 = vld [vmem:[#allocation3 + $0x2d4] sm:$0xf0]  ;;  %v3736_v57 = vld [vmem:[#allocation3 + $0x3c8] sm:$0xf] }
  0x7f   : > { %2025 = vmatpush.bf16.msra.mxu3 %v3765_v6  ;;  %2031 = vmatpush.bf16.msrb.mxu0 %v4005_v7  ;;  %v3288_v6 = vld [vmem:[#allocation3 + $0x48] sm:$0xf]  ;;  %v4525_v7 = vld [vmem:[#allocation3 + $0x54] sm:$0xf0]  ;;  %v4021_v47 = vor.u32 %v4706_v30, %v4018_v31 }
  0x80   : > { %2044 = vmatpush.bf16.msrb.mxu1 %v4133_v8  ;;  %2013 = vmatmul.bf16.vlgmr.msra.gmra.mxu2 %v5158_v10  ;;  %v3416_v8 = vld [vmem:[#allocation3 + $0x148] sm:$0xf]  ;;  %v3289_v13 = vor.u32 %v4525_v7, %v3288_v6  ;;  %v4637_v59 = vld [vmem:[#allocation3 + $0x3d4] sm:$0xf0] }
  0x81   : > { %2057 = vmatpush.bf16.msrb.mxu2 %v3369_v9  ;;  %2000 = vmatmul.bf16.vlgmr.msra.gmra.mxu1 %v5154_v2  ;;  %v4557_v9 = vld [vmem:[#allocation3 + $0x154] sm:$0xf0]  ;;  %v3864_v60 = vld [vmem:[#allocation3 + $0x4c8] sm:$0xf]  ;;  %v3737_v1 = vor.u32 %v4637_v59, %v3736_v57 }
  0x82   : > { %2026 = vmatmul.bf16.vlgmr.msra.gmra.mxu3 %v5171_v39  ;;  %v3417_v19 = vor.u32 %v4557_v9, %v3416_v8  ;;  %v4601_v5 = vld [vmem:[#allocation3 + $0x2b4] sm:$0xf0]  ;;  %v3720_v6 = vld [vmem:[#allocation3 + $0x3a8] sm:$0xf] }
  0x83   : > { %2070 = vmatpush.bf16.msrb.mxu3 %v3497_v14  ;;  %2032 = vmatpush.bf16.msrb.mxu0 %v3989_v22  ;;  %v4678_v14 = vld [vmem:[#allocation3 + $0x524] sm:$0xf]  ;;  %v4521_v22 = vld [vmem:[#allocation3 + $0x34] sm:$0xf0]  ;;  %v3848_v9 = vld [vmem:[#allocation3 + $0x4a8] sm:$0xf] }
  0x84   : > { %2045 = vmatpush.bf16.msrb.mxu1 %v4117_v23  ;;  %v3400_v23 = vld [vmem:[#allocation3 + $0x128] sm:$0xf]  ;;  %v3909_v25 = vor.u32 %v4678_v14, %v3906_v17  ;;  %v3273_v29 = vor.u32 %v4521_v22, %v3272_v21  ;;  %v4633_v8 = vld [vmem:[#allocation3 + $0x3b4] sm:$0xf0] }
  0x85   : > { %2058 = vmatpush.bf16.msrb.mxu2 %v3353_v24  ;;  %v4553_v24 = vld [vmem:[#allocation3 + $0x134] sm:$0xf0]  ;;  %v3721_v17 = vor.u32 %v4633_v8, %v3720_v6  ;;  %v3704_v21 = vld [vmem:[#allocation3 + $0x388] sm:$0xf] }
  0x86   : > { %v3401_v33 = vor.u32 %v4553_v24, %v3400_v23  ;;  %v4629_v23 = vld [vmem:[#allocation3 + $0x394] sm:$0xf0]  ;;  %v3832_v24 = vld [vmem:[#allocation3 + $0x488] sm:$0xf] }
  0x87   : > { %2071 = vmatpush.bf16.msrb.mxu3 %v3481_v28  ;;  %2033 = vmatpush.bf16.msrb.mxu0 %v3973_v34  ;;  %v4037_v28 = vor.u32 %v4710_v18, %v4034_v20  ;;  %v4517_v34 = vld [vmem:[#allocation3 + $0x14] sm:$0xf0]  ;;  %v3560_v31 = vld [vmem:[#allocation3 + $0x268] sm:$0xf] }
  0x88   : > { %2046 = vmatpush.bf16.msrb.mxu1 %v4101_v36  ;;  %v3384_v36 = vld [vmem:[#allocation3 + $0x108] sm:$0xf]  ;;  %v3257_v48 = vor.u32 %v4517_v34, %v3256_v32  ;;  %v4597_v20 = vld [vmem:[#allocation3 + $0x294] sm:$0xf0] }
  0x89   : > { %2059 = vmatpush.bf16.msrb.mxu2 %v3337_v37  ;;  %v4549_v37 = vld [vmem:[#allocation3 + $0x114] sm:$0xf0]  ;;  %v3944_v40 = vld [vmem:[#allocation3 + $0x568] sm:$0xf] }
  0x8a   : > { %v4593_v32 = vld [vmem:[#allocation3 + $0x274] sm:$0xf0]  ;;  %v3544_v46 = vld [vmem:[#allocation3 + $0x248] sm:$0xf] }
  0x8b   : > { %2072 = vmatpush.bf16.msrb.mxu3 %v3465_v43  ;;  %2034 = vmatpush.bf16.msrb.mxu0 %v3957_v49  ;;  %v3893_v43 = vor.u32 %v4674_v26, %v3890_v27  ;;  %v4008_v49 = vld [vmem:[#allocation3 + $0x5e8] sm:$0xf]  ;;  %v4693_v27 = vld [vmem:[#allocation3 + $0x594] sm:$0xf0] }
  0x8c   : > { %2047 = vmatpush.bf16.msrb.mxu1 %v4085_v50  ;;  %v4705_v50 = vld [vmem:[#allocation3 + $0x5f4] sm:$0xf0]  ;;  %v3960_v26 = vld [vmem:[#allocation3 + $0x588] sm:$0xf] }
  0x8d   : > { %2060 = vmatpush.bf16.msrb.mxu2 %v3321_v51  ;;  %v3385_v51 = vor.u32 %v4549_v37, %v3384_v36  ;;  %v4009_v58 = vor.u32 %v4705_v50, %v4008_v49  ;;  %v3961_v34 = vor.u32 %v4693_v27, %v3960_v26  ;;  %v4625_v36 = vld [vmem:[#allocation3 + $0x374] sm:$0xf0]  ;;  %v3816_v37 = vld [vmem:[#allocation3 + $0x468] sm:$0xf] }
  0x8e   : > { %v4657_v38 = vld [vmem:[#allocation3 + $0x474] sm:$0xf0] }
  0x8f   : > { %2073 = vmatpush.bf16.msrb.mxu3 %v3449_v55  ;;  %2035 = vmatpush.bf16.msrb.mxu0 %v3941_v61  ;;  %v3608_v55 = vld [vmem:[#allocation3 + $0x2c8] sm:$0xf]  ;;  %v4669_v61 = vld [vmem:[#allocation3 + $0x4d4] sm:$0xf0]  ;;  %v3817_v45 = vor.u32 %v4657_v38, %v3816_v37  ;;  %v4539_v37 = vld [vmem:[#allocation3 + $0xcc] sm:$0xf] }
  0x90   : > { %2048 = vmatpush.bf16.msrb.mxu1 %v4069_v62  ;;  %v3992_v62 = vld [vmem:[#allocation3 + $0x5c8] sm:$0xf]  ;;  %v3609_v0 = vor.u32 %v4605_v56, %v3608_v55  ;;  %v3865_v3 = vor.u32 %v4669_v61, %v3864_v60  ;;  %v4689_v41 = vld [vmem:[#allocation3 + $0x574] sm:$0xf0] }
  0x91   : > { %2061 = vmatpush.bf16.msrb.mxu2 %v3305_v63  ;;  %v4701_v63 = vld [vmem:[#allocation3 + $0x5d4] sm:$0xf0]  ;;  %v3945_v49 = vor.u32 %v4689_v41, %v3944_v40  ;;  %v3656_v60 = vld [vmem:[#allocation3 + $0x328] sm:$0xf]  ;;  %v3354_v40 = vld [vmem:[#allocation3 + $0xd8] sm:$0xf0] }
  0x92   : > { %v3993_v7 = vor.u32 %v4701_v63, %v3992_v62  ;;  %v4621_v50 = vld [vmem:[#allocation3 + $0x354] sm:$0xf0]  ;;  %v3784_v63 = vld [vmem:[#allocation3 + $0x428] sm:$0xf]  ;;  %v4571_v41 = vld [vmem:[#allocation3 + $0x1cc] sm:$0xf] }
  0x93   : > { %2074 = vmatpush.bf16.msrb.mxu3 %v3433_v4  ;;  %2036 = vmatpush.bf16.msrb.mxu0 %v3925_v11  ;;  %v3592_v4 = vld [vmem:[#allocation3 + $0x2a8] sm:$0xf]  ;;  %v4665_v11 = vld [vmem:[#allocation3 + $0x4b4] sm:$0xf0] }
  0x94   : > { %2049 = vmatpush.bf16.msrb.mxu1 %v4053_v12  ;;  %v3976_v12 = vld [vmem:[#allocation3 + $0x5a8] sm:$0xf]  ;;  %v3593_v14 = vor.u32 %v4601_v5, %v3592_v4  ;;  %v3849_v18 = vor.u32 %v4665_v11, %v3848_v9  ;;  %v4585_v59 = vld [vmem:[#allocation3 + $0x234] sm:$0xf0] }
  0x95   : > { %2062 = vmatpush.bf16.msrb.mxu2 %v3289_v13  ;;  %v4697_v13 = vld [vmem:[#allocation3 + $0x5b4] sm:$0xf0]  ;;  %v3512_v5 = vld [vmem:[#allocation3 + $0x208] sm:$0xf] }
  0x96   : > { %v3977_v22 = vor.u32 %v4697_v13, %v3976_v12  ;;  %v4617_v62 = vld [vmem:[#allocation3 + $0x334] sm:$0xf0]  ;;  %v3640_v9 = vld [vmem:[#allocation3 + $0x308] sm:$0xf] }
  0x97   : > { %2075 = vmatpush.bf16.msrb.mxu3 %v3417_v19  ;;  %2037 = vmatpush.bf16.msrb.mxu0 %v3909_v25  ;;  %v3576_v19 = vld [vmem:[#allocation3 + $0x288] sm:$0xf]  ;;  %v4661_v25 = vld [vmem:[#allocation3 + $0x494] sm:$0xf0] }
  0x98   : > { %2050 = vmatpush.bf16.msrb.mxu1 %v4037_v28  ;;  %v3577_v28 = vor.u32 %v4597_v20, %v3576_v19  ;;  %v3833_v30 = vor.u32 %v4661_v25, %v3832_v24  ;;  %v4581_v6 = vld [vmem:[#allocation3 + $0x214] sm:$0xf0]  ;;  %v3768_v12 = vld [vmem:[#allocation3 + $0x408] sm:$0xf]  ;;  %v4575_v24 = vld [vmem:[#allocation3 + $0x1ec] sm:$0xf] }
  0x99   : > { %2063 = vmatpush.bf16.msrb.mxu2 %v3273_v29  ;;  %v3705_v29 = vor.u32 %v4629_v23, %v3704_v21  ;;  %v4613_v11 = vld [vmem:[#allocation3 + $0x314] sm:$0xf0]  ;;  %v4136_v19 = vld [vmem:[#allocation3 + $0x6e8] sm:$0xf]  ;;  %v4543_v21 = vld [vmem:[#allocation3 + $0xec] sm:$0xf] }
  0x9a   : > { %v4737_v20 = vld [vmem:[#allocation3 + $0x6f4] sm:$0xf0]  ;;  %v3370_v23 = vld [vmem:[#allocation3 + $0xf8] sm:$0xf0]  ;;  %v3641_v26 = vor.u32 %v4613_v11, %v3640_v9  ;;  %v4072_v11 = vld [vmem:[#allocation3 + $0x668] sm:$0xf] }
  0x9b   : > { %2076 = vmatpush.bf16.msrb.mxu3 %v3401_v33  ;;  %2038 = vmatpush.bf16.msrb.mxu0 %v3893_v43  ;;  %v3688_v33 = vld [vmem:[#allocation3 + $0x368] sm:$0xf]  ;;  %v3561_v43 = vor.u32 %v4593_v32, %v3560_v31  ;;  %v3498_v25 = vld [vmem:[#allocation3 + $0x1f8] sm:$0xf0]  ;;  %v4137_v31 = vor.u32 %v4737_v20, %v4136_v19  ;;  %v3373_v32 = vor.u32 %v4543_v21, %v3370_v23  ;;  %v4591_v20 = vld [vmem:[#allocation3 + $0x26c] sm:$0xf] }
  0x9c   : > { %2051 = vmatpush.bf16.msrb.mxu1 %v4021_v47  ;;  %v3689_v44 = vor.u32 %v4625_v36, %v3688_v33  ;;  %v4589_v47 = vld [vmem:[#allocation3 + $0x254] sm:$0xf0]  ;;  %v3501_v33 = vor.u32 %v4575_v24, %v3498_v25  ;;  %v3434_v19 = vld [vmem:[#allocation3 + $0x178] sm:$0xf0] }
  0x9d   : > { %2064 = vmatpush.bf16.msrb.mxu2 %v3257_v48  ;;  %v3672_v48 = vld [vmem:[#allocation3 + $0x348] sm:$0xf]  ;;  %v3545_v55 = vor.u32 %v4589_v47, %v3544_v46  ;;  %v4733_v36 = vld [vmem:[#allocation3 + $0x6d4] sm:$0xf0]  ;;  %v3357_v47 = vor.u32 %v4539_v37, %v3354_v40  ;;  %v3562_v21 = vld [vmem:[#allocation3 + $0x278] sm:$0xf0] }
  0x9e   : > { %2039 = vmatmul.bf16.vlgmr.msrb.gmra.mxu0 %v5173_v42  ;;  %v3673_v56 = vor.u32 %v4621_v50, %v3672_v48  ;;  %v4729_v50 = vld [vmem:[#allocation3 + $0x6b4] sm:$0xf0]  ;;  %v4040_v40 = vld [vmem:[#allocation3 + $0x628] sm:$0xf] }
  0x9f   : > { %2077 = vmatpush.bf16.msrb.mxu3 %v3385_v51  ;;  %2083 = vmatpush.bf16.msra.mxu0 %v3625_v52  ;;  %v3800_v51 = vld [vmem:[#allocation3 + $0x448] sm:$0xf]  ;;  %v4653_v52 = vld [vmem:[#allocation3 + $0x454] sm:$0xf0] }
  0xa0   : > { %2096 = vmatpush.bf16.msra.mxu1 %v3753_v53  ;;  %2065 = vmatmul.bf16.vlgmr.msrb.gmra.mxu2 %v5160_v15  ;;  %v3928_v53 = vld [vmem:[#allocation3 + $0x548] sm:$0xf]  ;;  %v3801_v57 = vor.u32 %v4653_v52, %v3800_v51  ;;  %v4535_v51 = vld [vmem:[#allocation3 + $0xac] sm:$0xf] }
  0xa1   : > { %2109 = vmatpush.bf16.msra.mxu2 %v3881_v54  ;;  %2052 = vmatmul.bf16.vlgmr.msrb.gmra.mxu1 %v5169_v35  ;;  %v4685_v54 = vld [vmem:[#allocation3 + $0x554] sm:$0xf0] }
  0xa2   : > { %2078 = vmatmul.bf16.vlgmr.msrb.gmra.mxu3 %v5162_v16  ;;  %v3929_v61 = vor.u32 %v4685_v54, %v3928_v53  ;;  %v3338_v53 = vld [vmem:[#allocation3 + $0xb8] sm:$0xf0]  ;;  %v4567_v54 = vld [vmem:[#allocation3 + $0x1ac] sm:$0xf] }
  0xa3   : > { %2122 = vmatpush.bf16.msra.mxu3 %v4009_v58  ;;  %2084 = vmatpush.bf16.msra.mxu0 %v3609_v0  ;;  %v3528_v58 = vld [vmem:[#allocation3 + $0x228] sm:$0xf]  ;;  %v4649_v0 = vld [vmem:[#allocation3 + $0x434] sm:$0xf0] }
  0xa4   : > { %2097 = vmatpush.bf16.msra.mxu1 %v3737_v1  ;;  %v3912_v1 = vld [vmem:[#allocation3 + $0x528] sm:$0xf]  ;;  %v3529_v4 = vor.u32 %v4585_v59, %v3528_v58  ;;  %v3785_v8 = vor.u32 %v4649_v0, %v3784_v63  ;;  %v3341_v59 = vor.u32 %v4535_v51, %v3338_v53  ;;  %v4531_v63 = vld [vmem:[#allocation3 + $0x8c] sm:$0xf] }
  0xa5   : > { %2110 = vmatpush.bf16.msra.mxu2 %v3865_v3  ;;  %v4681_v3 = vld [vmem:[#allocation3 + $0x534] sm:$0xf0]  ;;  %v4583_v51 = vld [vmem:[#allocation3 + $0x22c] sm:$0xf] }
  0xa6   : > { %v3913_v13 = vor.u32 %v4681_v3, %v3912_v1  ;;  %v3322_v1 = vld [vmem:[#allocation3 + $0x98] sm:$0xf0]  ;;  %v4563_v3 = vld [vmem:[#allocation3 + $0x18c] sm:$0xf] }
  0xa7   : > { %2123 = vmatpush.bf16.msra.mxu3 %v3993_v7  ;;  %2085 = vmatpush.bf16.msra.mxu0 %v3593_v14  ;;  %v3657_v7 = vor.u32 %v4617_v62, %v3656_v60  ;;  %v4645_v14 = vld [vmem:[#allocation3 + $0x414] sm:$0xf0] }
  0xa8   : > { %2098 = vmatpush.bf16.msra.mxu1 %v3721_v17  ;;  %v3896_v17 = vld [vmem:[#allocation3 + $0x508] sm:$0xf]  ;;  %v3769_v27 = vor.u32 %v4645_v14, %v3768_v12  ;;  %v4725_v62 = vld [vmem:[#allocation3 + $0x694] sm:$0xf0] }
  0xa9   : > { %2111 = vmatpush.bf16.msra.mxu2 %v3849_v18  ;;  %v4677_v18 = vld [vmem:[#allocation3 + $0x514] sm:$0xf0] }
  0xaa   : > { %v4721_v12 = vld [vmem:[#allocation3 + $0x674] sm:$0xf0] }
  0xab   : > { %2124 = vmatpush.bf16.msra.mxu3 %v3977_v22  ;;  %2086 = vmatpush.bf16.msra.mxu0 %v3577_v28  ;;  %v3513_v22 = vor.u32 %v4581_v6, %v3512_v5  ;;  %v4607_v28 = vld [vmem:[#allocation3 + $0x2ec] sm:$0xf]  ;;  %v3578_v6 = vld [vmem:[#allocation3 + $0x298] sm:$0xf0] }
  0xac   : > { %2099 = vmatpush.bf16.msra.mxu1 %v3705_v29  ;;  %v3626_v29 = vld [vmem:[#allocation3 + $0x2f8] sm:$0xf0]  ;;  %v4595_v5 = vld [vmem:[#allocation3 + $0x28c] sm:$0xf] }
  0xad   : > { %2112 = vmatpush.bf16.msra.mxu2 %v3833_v30  ;;  %v3897_v30 = vor.u32 %v4677_v18, %v3896_v17  ;;  %v3629_v38 = vor.u32 %v4607_v28, %v3626_v29  ;;  %v3581_v14 = vor.u32 %v4595_v5, %v3578_v6  ;;  %v3306_v17 = vld [vmem:[#allocation3 + $0x78] sm:$0xf0]  ;;  %v4559_v18 = vld [vmem:[#allocation3 + $0x16c] sm:$0xf]  ;;  %v4717_v28 = vld [vmem:[#allocation3 + $0x654] sm:$0xf0] }
  0xae   : > { %v4523_v29 = vld [vmem:[#allocation3 + $0x4c] sm:$0xf]  ;;  %v3514_v5 = vld [vmem:[#allocation3 + $0x218] sm:$0xf0] }
  0xaf   : > { %2125 = vmatpush.bf16.msra.mxu3 %v3961_v34  ;;  %2087 = vmatpush.bf16.msra.mxu0 %v3561_v43  ;;  %v4120_v34 = vld [vmem:[#allocation3 + $0x6c8] sm:$0xf]  ;;  %v3482_v43 = vld [vmem:[#allocation3 + $0x1d8] sm:$0xf0]  ;;  %v4639_v6 = vld [vmem:[#allocation3 + $0x3ec] sm:$0xf] }
  0xb0   : > { %2100 = vmatpush.bf16.msra.mxu1 %v3689_v44  ;;  %v4603_v44 = vld [vmem:[#allocation3 + $0x2cc] sm:$0xf]  ;;  %v4121_v46 = vor.u32 %v4733_v36, %v4120_v34  ;;  %v3485_v48 = vor.u32 %v4571_v41, %v3482_v43  ;;  %v3546_v36 = vld [vmem:[#allocation3 + $0x258] sm:$0xf0] }
  0xb1   : > { %2113 = vmatpush.bf16.msra.mxu2 %v3817_v45  ;;  %v3610_v45 = vld [vmem:[#allocation3 + $0x2d8] sm:$0xf0]  ;;  %v4587_v34 = vld [vmem:[#allocation3 + $0x24c] sm:$0xf] }
  0xb2   : > { %v3613_v52 = vor.u32 %v4603_v44, %v3610_v45  ;;  %v4713_v44 = vld [vmem:[#allocation3 + $0x634] sm:$0xf0]  ;;  %v4519_v45 = vld [vmem:[#allocation3 + $0x2c] sm:$0xf] }
  0xb3   : > { %2126 = vmatpush.bf16.msra.mxu3 %v3945_v49  ;;  %2088 = vmatpush.bf16.msra.mxu0 %v3545_v55  ;;  %v4104_v49 = vld [vmem:[#allocation3 + $0x6a8] sm:$0xf]  ;;  %v3466_v55 = vld [vmem:[#allocation3 + $0x1b8] sm:$0xf0] }
  0xb4   : > { %2101 = vmatpush.bf16.msra.mxu1 %v3673_v56  ;;  %v4599_v56 = vld [vmem:[#allocation3 + $0x2ac] sm:$0xf]  ;;  %v4105_v58 = vor.u32 %v4729_v50, %v4104_v49  ;;  %v3469_v60 = vor.u32 %v4567_v54, %v3466_v55  ;;  %v3402_v50 = vld [vmem:[#allocation3 + $0x138] sm:$0xf0]  ;;  %v4041_v54 = vor.u32 %v4713_v44, %v4040_v40 }
  0xb5   : > { %2114 = vmatpush.bf16.msra.mxu2 %v3801_v57  ;;  %v3594_v57 = vld [vmem:[#allocation3 + $0x2b8] sm:$0xf0]  ;;  %v4551_v49 = vld [vmem:[#allocation3 + $0x12c] sm:$0xf] }
  0xb6   : > { %v3597_v0 = vor.u32 %v4599_v56, %v3594_v57  ;;  %v4024_v56 = vld [vmem:[#allocation3 + $0x608] sm:$0xf]  ;;  %v4709_v57 = vld [vmem:[#allocation3 + $0x614] sm:$0xf0]  ;;  %v4122_v40 = vld [vmem:[#allocation3 + $0x6d8] sm:$0xf0] }
  0xb7   : > { %2127 = vmatpush.bf16.msra.mxu3 %v3929_v61  ;;  %2089 = vmatpush.bf16.msra.mxu0 %v3529_v4  ;;  %v4088_v61 = vld [vmem:[#allocation3 + $0x688] sm:$0xf]  ;;  %v3450_v4 = vld [vmem:[#allocation3 + $0x198] sm:$0xf0] }
  0xb8   : > { %2102 = vmatpush.bf16.msra.mxu1 %v3657_v7  ;;  %v4089_v7 = vor.u32 %v4725_v62, %v4088_v61  ;;  %v3453_v9 = vor.u32 %v4563_v3, %v3450_v4  ;;  %v3405_v61 = vor.u32 %v4551_v49, %v3402_v50  ;;  %v4515_v62 = vld [vmem:[#allocation3 + $0xc] sm:$0xf]  ;;  %v3386_v3 = vld [vmem:[#allocation3 + $0x118] sm:$0xf0] }
  0xb9   : > { %2115 = vmatpush.bf16.msra.mxu2 %v3785_v8  ;;  %v3325_v8 = vor.u32 %v4531_v63, %v3322_v1  ;;  %v3258_v63 = vld [vmem:[#allocation3 + $0x18] sm:$0xf0]  ;;  %v4579_v4 = vld [vmem:[#allocation3 + $0x20c] sm:$0xf] }
  0xba   : > { %v3850_v50 = vld [vmem:[#allocation3 + $0x4b8] sm:$0xf0] }
  0xbb   : > { %2128 = vmatpush.bf16.msra.mxu3 %v3913_v13  ;;  %2090 = vmatpush.bf16.msra.mxu0 %v3513_v22  ;;  %v4527_v13 = vld [vmem:[#allocation3 + $0x6c] sm:$0xf]  ;;  %v4073_v22 = vor.u32 %v4721_v12, %v4072_v11  ;;  %v4025_v12 = vor.u32 %v4709_v57, %v4024_v56 }
  0xbc   : > { %2103 = vmatpush.bf16.msra.mxu1 %v3641_v26  ;;  %v3309_v25 = vor.u32 %v4527_v13, %v3306_v17  ;;  %v3437_v26 = vor.u32 %v4559_v18, %v3434_v19  ;;  %v3882_v13 = vld [vmem:[#allocation3 + $0x4f8] sm:$0xf0]  ;;  %v3261_v18 = vor.u32 %v4515_v62, %v3258_v63  ;;  %v4691_v63 = vld [vmem:[#allocation3 + $0x58c] sm:$0xf] }
  0xbd   : > { %2116 = vmatpush.bf16.msra.mxu2 %v3769_v27  ;;  %v4056_v27 = vld [vmem:[#allocation3 + $0x648] sm:$0xf]  ;;  %v4010_v17 = vld [vmem:[#allocation3 + $0x5f8] sm:$0xf0] }
  0xbe   : > { %2091 = vmatmul.bf16.vlgmr.msra.gmra.mxu0 %v5154_v2 }
  0xbf   : > { %2129 = vmatpush.bf16.msra.mxu3 %v3897_v30  ;;  %2135 = vmatpush.bf16.msrb.mxu0 %v4137_v31  ;;  %v3565_v30 = vor.u32 %v4591_v20, %v3562_v21  ;;  %v3290_v31 = vld [vmem:[#allocation3 + $0x58] sm:$0xf0]  ;;  %v4735_v20 = vld [vmem:[#allocation3 + $0x6ec] sm:$0xf] }
  0xc0   : > { %2148 = vmatpush.bf16.msrb.mxu1 %v3373_v32  ;;  %2117 = vmatmul.bf16.vlgmr.msra.gmra.mxu2 %v5171_v39  ;;  %v4555_v32 = vld [vmem:[#allocation3 + $0x14c] sm:$0xf]  ;;  %v3293_v41 = vor.u32 %v4523_v29, %v3290_v31  ;;  %v4138_v21 = vld [vmem:[#allocation3 + $0x6f8] sm:$0xf0] }
  0xc1   : > { %2161 = vmatpush.bf16.msrb.mxu2 %v3501_v33  ;;  %2104 = vmatmul.bf16.vlgmr.msra.gmra.mxu1 %v5158_v10  ;;  %v3418_v33 = vld [vmem:[#allocation3 + $0x158] sm:$0xf0] }
  0xc2   : > { %2130 = vmatmul.bf16.vlgmr.msra.gmra.mxu3 %v5173_v42  ;;  %v3421_v43 = vor.u32 %v4555_v32, %v3418_v33  ;;  %v3738_v29 = vld [vmem:[#allocation3 + $0x3d8] sm:$0xf0]  ;;  %v4141_v32 = vor.u32 %v4735_v20, %v4138_v21 }
  0xc3   : > { %2174 = vmatpush.bf16.msrb.mxu3 %v3629_v38  ;;  %2136 = vmatpush.bf16.msrb.mxu0 %v4121_v46  ;;  %v5193_v37 = vpop.f32.mrf.mxu2  ;;  %v4057_v38 = vor.u32 %v4717_v28, %v4056_v27  ;;  %v5198_v46 = vld [vmem:[%s5300_s2] sm:$0xf]  ;;  %v4635_v28 = vld [vmem:[#allocation3 + $0x3cc] sm:$0xf] }
  0xc4   : > { %2149 = vmatpush.bf16.msrb.mxu1 %v3357_v47  ;;  %v3549_v47 = vor.u32 %v4587_v34, %v3546_v36  ;;  %v5200_v53 = vpop.f32.mrf.mxu3  ;;  %v722_v55 = vperm.slane %v5198_v46, 0  ;;  %v3866_v33 = vld [vmem:[#allocation3 + $0x4d8] sm:$0xf0]  ;;  %v4699_v34 = vld [vmem:[#allocation3 + $0x5cc] sm:$0xf] }
  0xc5   : > { %2162 = vmatpush.bf16.msrb.mxu2 %v3485_v48  ;;  %v3274_v48 = vld [vmem:[#allocation3 + $0x38] sm:$0xf0] }
  0xc6   : > { %v3994_v36 = vld [vmem:[#allocation3 + $0x5d8] sm:$0xf0] }
  0xc7   : > { %2175 = vmatpush.bf16.msrb.mxu3 %v3613_v52  ;;  %2137 = vmatpush.bf16.msrb.mxu0 %v4105_v58  ;;  %v1884_v23 = vpop.f32.mrf.mxu0  ;;  %v5191_v24 = vpop.f32.mrf.mxu1  ;;  %v3530_v52 = vld [vmem:[#allocation3 + $0x238] sm:$0xf0]  ;;  %v3997_v44 = vor.u32 %v4699_v34, %v3994_v36 }
  0xc8   : > { %2150 = vmatpush.bf16.msrb.mxu1 %v3341_v59  ;;  %v3533_v1 = vor.u32 %v4583_v51, %v3530_v52  ;;  %v1885_v11 = vadd.f32 %v1884_v23, %v722_v55  ;;  %v4695_v51 = vld [vmem:[#allocation3 + $0x5ac] sm:$0xf]  ;;  %v3978_v52 = vld [vmem:[#allocation3 + $0x5b8] sm:$0xf0] }
  0xc9   : > { %2163 = vmatpush.bf16.msrb.mxu2 %v3469_v60  ;;  %v3277_v60 = vor.u32 %v4519_v45, %v3274_v48  ;;  %v4631_v45 = vld [vmem:[#allocation3 + $0x3ac] sm:$0xf]  ;;  %v4106_v55 = vld [vmem:[#allocation3 + $0x6b8] sm:$0xf0] }
  0xca   : > { %v1898_v23 = vadd.f32 %v5191_v24, %v1885_v11  ;;  %v4663_v48 = vld [vmem:[#allocation3 + $0x4ac] sm:$0xf] }
  0xcb   : > { %2176 = vmatpush.bf16.msrb.mxu3 %v3597_v0  ;;  %2138 = vmatpush.bf16.msrb.mxu0 %v4089_v7  ;;  %v4547_v0 = vld [vmem:[#allocation3 + $0x10c] sm:$0xf]  ;;  %v3754_v7 = vld [vmem:[#allocation3 + $0x3f8] sm:$0xf0]  ;;  %v3853_v57 = vor.u32 %v4663_v48, %v3850_v50 }
  0xcc   : > { %2151 = vmatpush.bf16.msrb.mxu1 %v3325_v8  ;;  %v4671_v8 = vld [vmem:[#allocation3 + $0x4ec] sm:$0xf]  ;;  %v3389_v19 = vor.u32 %v4547_v0, %v3386_v3  ;;  %v1925_v31 = vpop.f32.mrf.mxu3  ;;  %v1911_v24 = vadd.f32 %v5193_v37, %v1898_v23  ;;  %v3981_v37 = vor.u32 %v4695_v51, %v3978_v52  ;;  %v3962_v0 = vld [vmem:[#allocation3 + $0x598] sm:$0xf0] }
  0xcd   : > { %2164 = vmatpush.bf16.msrb.mxu2 %v3453_v9  ;;  %v1912_v9 = vpop.f32.mrf.mxu2  ;;  %v4683_v31 = vld [vmem:[#allocation3 + $0x54c] sm:$0xf]  ;;  %v3930_v23 = vld [vmem:[#allocation3 + $0x558] sm:$0xf0] }
  0xce   : > { %v1924_v62 = vadd.f32 %v5200_v53, %v1911_v24  ;;  %v4655_v9 = vld [vmem:[#allocation3 + $0x46c] sm:$0xf]  ;;  %v3818_v53 = vld [vmem:[#allocation3 + $0x478] sm:$0xf0] }
  0xcf   : > { %2177 = vmatpush.bf16.msrb.mxu3 %v3581_v14  ;;  %2139 = vmatpush.bf16.msrb.mxu0 %v4073_v22  ;;  %v1886_v58 = vpop.f32.mrf.mxu0  ;;  %v1899_v59 = vpop.f32.mrf.mxu1  ;;  %v4703_v14 = vld [vmem:[#allocation3 + $0x5ec] sm:$0xf]  ;;  %v3517_v22 = vor.u32 %v4579_v4, %v3514_v5  ;;  %v3821_v20 = vor.u32 %v4655_v9, %v3818_v53  ;;  %v3914_v51 = vld [vmem:[#allocation3 + $0x538] sm:$0xf0] }
  0xd0   : > { %2152 = vmatpush.bf16.msrb.mxu1 %v3309_v25  ;;  %v3757_v25 = vor.u32 %v4639_v6, %v3754_v7  ;;  %v4013_v27 = vor.u32 %v4703_v14, %v4010_v17  ;;  %v4627_v58 = vld [vmem:[#allocation3 + $0x38c] sm:$0xf]  ;;  %v3706_v59 = vld [vmem:[#allocation3 + $0x398] sm:$0xf0]  ;;  %v3965_v6 = vor.u32 %v4691_v63, %v3962_v0 }
  0xd1   : > { %2165 = vmatpush.bf16.msrb.mxu2 %v3437_v26  ;;  %v3885_v26 = vor.u32 %v4671_v8, %v3882_v13  ;;  %v3709_v3 = vor.u32 %v4627_v58, %v3706_v59  ;;  %v4623_v7 = vld [vmem:[#allocation3 + $0x36c] sm:$0xf]  ;;  %v3690_v8 = vld [vmem:[#allocation3 + $0x378] sm:$0xf0] }
  0xd2   : > { %v4687_v13 = vld [vmem:[#allocation3 + $0x56c] sm:$0xf]  ;;  %v3946_v14 = vld [vmem:[#allocation3 + $0x578] sm:$0xf0] }
  0xd3   : > { %2178 = vmatpush.bf16.msrb.mxu3 %v3565_v30  ;;  %2140 = vmatpush.bf16.msrb.mxu0 %v4057_v38  ;;  %v4667_v30 = vld [vmem:[#allocation3 + $0x4cc] sm:$0xf]  ;;  %v3949_v21 = vor.u32 %v4687_v13, %v3946_v14  ;;  %v3898_v0 = vld [vmem:[#allocation3 + $0x518] sm:$0xf0]  ;;  %v4192_v13 = vld [vmem:[#allocation5 + $0x60] sm:$0xf] }
  0xd4   : > { %2153 = vmatpush.bf16.msrb.mxu1 %v3293_v41  ;;  %v4731_v38 = vld [vmem:[#allocation3 + $0x6cc] sm:$0xf]  ;;  %v3741_v41 = vor.u32 %v4635_v28, %v3738_v29  ;;  %v4751_v14 = vld [vmem:[#allocation5 + $0x64] sm:$0xf0] }
  0xd5   : > { %2166 = vmatpush.bf16.msrb.mxu2 %v3421_v43  ;;  %v3869_v43 = vor.u32 %v4667_v30, %v3866_v33  ;;  %v4125_v49 = vor.u32 %v4731_v38, %v4122_v40  ;;  %v4719_v17 = vld [vmem:[#allocation3 + $0x66c] sm:$0xf]  ;;  %v3802_v30 = vld [vmem:[#allocation3 + $0x458] sm:$0xf0] }
  0xd6   : > { %v4058_v33 = vld [vmem:[#allocation3 + $0x658] sm:$0xf0]  ;;  %v4679_v50 = vld [vmem:[#allocation3 + $0x52c] sm:$0xf] }
  0xd7   : > { %2179 = vmatpush.bf16.msrb.mxu3 %v3549_v47  ;;  %2141 = vmatpush.bf16.msrb.mxu0 %v4041_v54  ;;  %v3722_v47 = vld [vmem:[#allocation3 + $0x3b8] sm:$0xf0]  ;;  %v4727_v54 = vld [vmem:[#allocation3 + $0x6ac] sm:$0xf]  ;;  %v3917_v58 = vor.u32 %v4679_v50, %v3914_v51 }
  0xd8   : > { %2154 = vmatpush.bf16.msrb.mxu1 %v3277_v60  ;;  %v3725_v56 = vor.u32 %v4631_v45, %v3722_v47  ;;  %v4659_v60 = vld [vmem:[#allocation3 + $0x48c] sm:$0xf]  ;;  %v3658_v45 = vld [vmem:[#allocation3 + $0x338] sm:$0xf0] }
  0xd9   : > { %2167 = vmatpush.bf16.msrb.mxu2 %v3405_v61  ;;  %v4109_v61 = vor.u32 %v4727_v54, %v4106_v55  ;;  %v4647_v47 = vld [vmem:[#allocation3 + $0x42c] sm:$0xf]  ;;  %v4042_v54 = vld [vmem:[#allocation3 + $0x638] sm:$0xf0] }
  0xda   : > { %v4711_v52 = vld [vmem:[#allocation3 + $0x62c] sm:$0xf] }
  0xdb   : > { %2180 = vmatpush.bf16.msrb.mxu3 %v3533_v1  ;;  %2142 = vmatpush.bf16.msrb.mxu0 %v4025_v12  ;;  %v4723_v1 = vld [vmem:[#allocation3 + $0x68c] sm:$0xf]  ;;  %v1936_v4 = vpop.f32.mrf.mxu0  ;;  %v4045_v63 = vor.u32 %v4711_v52, %v4042_v54  ;;  %v4224_v52 = vld [vmem:[#allocation5 + $0xa0] sm:$0xf]  ;;  %v4759_v54 = vld [vmem:[#allocation5 + $0xa4] sm:$0xf0] }
  0xdc   : > { %2155 = vmatpush.bf16.msrb.mxu1 %v3261_v18  ;;  %v1937_v12 = vadd.f32 %v1936_v4, %v1924_v62  ;;  %v4074_v18 = vld [vmem:[#allocation3 + $0x678] sm:$0xf0]  ;;  %v4643_v59 = vld [vmem:[#allocation3 + $0x40c] sm:$0xf]  ;;  %v4753_v4 = vld [vmem:[#allocation5 + $0x74] sm:$0xf0] }
  0xdd   : > { %2168 = vmatpush.bf16.msrb.mxu2 %v3389_v19  ;;  %v3693_v19 = vor.u32 %v4623_v7, %v3690_v8  ;;  %v4077_v29 = vor.u32 %v4719_v17, %v4074_v18  ;;  %v4769_v7 = vld [vmem:[#allocation5 + $0xf4] sm:$0xf0]  ;;  %v4256_v18 = vld [vmem:[#allocation5 + $0xe0] sm:$0xf] }
  0xde   : > { %2143 = vmatmul.bf16.vlgmr.msrb.gmra.mxu0 %v5169_v35 }
  0xdf   : > { %2181 = vmatpush.bf16.msrb.mxu3 %v3517_v22  ;;  %2187 = vmatpush.bf16.msra.mxu0 %v3757_v25  ;;  %v4619_v25 = vld [vmem:[#allocation3 + $0x34c] sm:$0xf] }
  0xe0   : > { %2200 = vmatpush.bf16.msra.mxu1 %v3885_v26  ;;  %2169 = vmatmul.bf16.vlgmr.msrb.gmra.mxu2 %v5162_v16  ;;  %v3834_v16 = vld [vmem:[#allocation3 + $0x498] sm:$0xf0] }
  0xe1   : > { %2213 = vmatpush.bf16.msra.mxu2 %v4013_v27  ;;  %2156 = vmatmul.bf16.vlgmr.msrb.gmra.mxu1 %v5160_v15  ;;  %v1949_v15 = vpop.f32.mrf.mxu1  ;;  %v3837_v5 = vor.u32 %v4659_v60, %v3834_v16  ;;  %v3674_v26 = vld [vmem:[#allocation3 + $0x358] sm:$0xf0]  ;;  %v4651_v27 = vld [vmem:[#allocation3 + $0x44c] sm:$0xf] }
  0xe2   : > { %2182 = vmatmul.bf16.vlgmr.msrb.gmra.mxu3 %v5154_v2  ;;  %v4090_v2 = vld [vmem:[#allocation3 + $0x698] sm:$0xf0]  ;;  %v1950_v28 = vadd.f32 %v1949_v15, %v1937_v12  ;;  %v3677_v36 = vor.u32 %v4619_v25, %v3674_v26  ;;  %v4749_v25 = vld [vmem:[#allocation5 + $0x54] sm:$0xf0] }
  0xe3   : > { %2226 = vmatpush.bf16.msra.mxu3 %v4141_v32  ;;  %2188 = vmatpush.bf16.msra.mxu0 %v3741_v41  ;;  %v4093_v11 = vor.u32 %v4723_v1, %v4090_v2  ;;  %v1962_v22 = vpop.f32.mrf.mxu2  ;;  %v4715_v32 = vld [vmem:[#allocation3 + $0x64c] sm:$0xf]  ;;  %v1938_v38 = vpop.f32.mrf.mxu0  ;;  %v3805_v41 = vor.u32 %v4651_v27, %v3802_v30  ;;  %v3770_v60 = vld [vmem:[#allocation3 + $0x418] sm:$0xf0]  ;;  %v4248_v27 = vld [vmem:[#allocation5 + $0xd0] sm:$0xf] }
  0xe4   : > { %2201 = vmatpush.bf16.msra.mxu1 %v3869_v43  ;;  %v3933_v43 = vor.u32 %v4683_v31, %v3930_v23  ;;  %v5212_v48 = vadd.f32 %v1962_v22, %v1950_v28  ;;  %v4061_v24 = vor.u32 %v4715_v32, %v4058_v33  ;;  %v4707_v1 = vld [vmem:[#allocation3 + $0x60c] sm:$0xf]  ;;  %v4026_v2 = vld [vmem:[#allocation3 + $0x618] sm:$0xf0]  ;;  %v3773_v8 = vor.u32 %v4643_v59, %v3770_v60  ;;  %v4184_v22 = vld [vmem:[#allocation5 + $0x50] sm:$0xf] }
  0xe5   : > { %2214 = vmatpush.bf16.msra.mxu2 %v3997_v44  ;;  %v5210_v34 = vpop.f32.mrf.mxu3  ;;  %v4615_v44 = vld [vmem:[#allocation3 + $0x32c] sm:$0xf]  ;;  %v4029_v12 = vor.u32 %v4707_v1, %v4026_v2  ;;  %v4765_v28 = vld [vmem:[#allocation5 + $0xd4] sm:$0xf0]  ;;  %v4176_v31 = vld [vmem:[#allocation5 + $0x40] sm:$0xf]  ;;  %v4225_v60 = vor.u32 %v4759_v54, %v4224_v52 }
  0xe6   : > { %v3661_v55 = vor.u32 %v4615_v44, %v3658_v45  ;;  %v2243_v16 = vmul.f32 0.044715, %v5212_v48  ;;  %v4747_v23 = vld [vmem:[#allocation5 + $0x44] sm:$0xf0]  ;;  %v4240_v32 = vld [vmem:[#allocation5 + $0xc0] sm:$0xf] }
  0xe7   : > { %2227 = vmatpush.bf16.msra.mxu3 %v4125_v49  ;;  %2189 = vmatpush.bf16.msra.mxu0 %v3725_v56  ;;  %v3786_v49 = vld [vmem:[#allocation3 + $0x438] sm:$0xf0]  ;;  %v4611_v56 = vld [vmem:[#allocation3 + $0x30c] sm:$0xf]  ;;  %v4763_v33 = vld [vmem:[#allocation5 + $0xc4] sm:$0xf0] }
  0xe8   : > { %2202 = vmatpush.bf16.msra.mxu1 %v3853_v57  ;;  %v3642_v57 = vld [vmem:[#allocation3 + $0x318] sm:$0xf0]  ;;  %v4761_v44 = vld [vmem:[#allocation5 + $0xb4] sm:$0xf0]  ;;  %v4144_v1 = vld [vmem:[#allocation5] sm:$0xf] }
  0xe9   : > { %2215 = vmatpush.bf16.msra.mxu2 %v3981_v37  ;;  %v1951_v40 = vpop.f32.mrf.mxu1  ;;  %v3789_v37 = vor.u32 %v4647_v47, %v3786_v49  ;;  %v4160_v47 = vld [vmem:[#allocation5 + $0x20] sm:$0xf]  ;;  %v4739_v2 = vld [vmem:[#allocation5 + $0x4] sm:$0xf0]  ;;  %v4328_v52 = vld [vmem:[#allocation5 + $0x170] sm:$0xf] }
  0xea   : > { %v4168_v40 = vld [vmem:[#allocation5 + $0x30] sm:$0xf]  ;;  %v4785_v54 = vld [vmem:[#allocation5 + $0x174] sm:$0xf0] }
  0xeb   : > { %2228 = vmatpush.bf16.msra.mxu3 %v4109_v61  ;;  %2190 = vmatpush.bf16.msra.mxu0 %v3709_v3  ;;  %v4675_v61 = vld [vmem:[#allocation3 + $0x50c] sm:$0xf]  ;;  %v1964_v62 = vpop.f32.mrf.mxu2  ;;  %v4200_v3 = vld [vmem:[#allocation5 + $0x70] sm:$0xf] }
  0xec   : > { %2203 = vmatpush.bf16.msra.mxu1 %v3837_v5  ;;  %v3645_v5 = vor.u32 %v4611_v56, %v3642_v57  ;;  %v3901_v9 = vor.u32 %v4675_v61, %v3898_v0  ;;  %v4201_v53 = vor.u32 %v4753_v4, %v4200_v3  ;;  %v4216_v62 = vld [vmem:[#allocation5 + $0x90] sm:$0xf]  ;;  %v4752_v3 = vld [vmem:[#allocation5 + $0x74] sm:$0xf] }
  0xed   : > { %2216 = vmatpush.bf16.msra.mxu2 %v3965_v6  ;;  %v1977_v15 = vpop.f32.mrf.mxu3  ;;  %v4264_v6 = vld [vmem:[#allocation5 + $0xf0] sm:$0xf] }
  0xee   : > { %v4265_v17 = vor.u32 %v4769_v7, %v4264_v6  ;;  %v4202_v6 = vld [vmem:[#allocation5 + $0x78] sm:$0xf0] }
  0xef   : > { %2229 = vmatpush.bf16.msra.mxu3 %v4093_v11  ;;  %2191 = vmatpush.bf16.msra.mxu0 %v3693_v19  ;;  %v2247_v11 = vmul.f32 %v2243_v16, %v5212_v48  ;;  %v4767_v19 = vld [vmem:[#allocation5 + $0xe4] sm:$0xf0]  ;;  %v4757_v16 = vld [vmem:[#allocation5 + $0x94] sm:$0xf0] }
  0xf0   : > { %2204 = vmatpush.bf16.msra.mxu1 %v3821_v20  ;;  %v4257_v26 = vor.u32 %v4767_v19, %v4256_v18  ;;  %v4750_v19 = vld [vmem:[#allocation5 + $0x64] sm:$0xf] }
  0xf1   : > { %2217 = vmatpush.bf16.msra.mxu2 %v3949_v21  ;;  %v2251_v20 = vmul.f32 %v2247_v11, %v5212_v48  ;;  %v4193_v21 = vor.u32 %v4751_v14, %v4192_v13  ;;  %v2239_v11 = vmul.f32 0.5, %v5212_v48  ;;  %v4205_v14 = vor.u32 %v4752_v3, %v4202_v6  ;;  %v4154_v6 = vld [vmem:[#allocation5 + $0x18] sm:$0xf0] }
  0xf3   : > { %2230 = vmatpush.bf16.msra.mxu3 %v4077_v29  ;;  %2192 = vmatpush.bf16.msra.mxu0 %v3677_v36  ;;  %v4185_v29 = vor.u32 %v4749_v25, %v4184_v22  ;;  %v2255_v30 = vadd.f32 %v2251_v20, %v5212_v48  ;;  %v4177_v36 = vor.u32 %v4747_v23, %v4176_v31  ;;  %v4194_v20 = vld [vmem:[#allocation5 + $0x68] sm:$0xf0]  ;;  %v4766_v22 = vld [vmem:[#allocation5 + $0xe4] sm:$0xf]  ;;  %v4764_v31 = vld [vmem:[#allocation5 + $0xd4] sm:$0xf] }
  0xf4   : > { %2205 = vmatpush.bf16.msra.mxu1 %v3805_v41  ;;  %v4258_v25 = vld [vmem:[#allocation5 + $0xe8] sm:$0xf0]  ;;  %v4197_v48 = vor.u32 %v4750_v19, %v4194_v20  ;;  %v4250_v23 = vld [vmem:[#allocation5 + $0xd8] sm:$0xf0] }
  0xf5   : > { %2218 = vmatpush.bf16.msra.mxu2 %v3933_v43  ;;  %v4241_v43 = vor.u32 %v4763_v33, %v4240_v32  ;;  %v4746_v33 = vld [vmem:[#allocation5 + $0x44] sm:$0xf] }
  0xf7   : > { %2231 = vmatpush.bf16.msra.mxu3 %v4061_v24  ;;  %2193 = vmatpush.bf16.msra.mxu0 %v3661_v55  ;;  %v4743_v24 = vld [vmem:[#allocation5 + $0x24] sm:$0xf0]  ;;  %v723_v55 = vperm.slane %v5198_v46, 1 }
  0xf8   : > { %2206 = vmatpush.bf16.msra.mxu1 %v3789_v37  ;;  %v4161_v56 = vor.u32 %v4743_v24, %v4160_v47  ;;  %v4152_v37 = vld [vmem:[#allocation5 + $0x10] sm:$0xf]  ;;  %v4170_v47 = vld [vmem:[#allocation5 + $0x38] sm:$0xf0] }
  0xf9   : > { %2219 = vmatpush.bf16.msra.mxu2 %v3917_v58  ;;  %v4741_v58 = vld [vmem:[#allocation5 + $0x14] sm:$0xf0] }
  0xfa   : > { %v4153_v0 = vor.u32 %v4741_v58, %v4152_v37  ;;  %v4742_v58 = vld [vmem:[#allocation5 + $0x24] sm:$0xf] }
  0xfb   : > { %2232 = vmatpush.bf16.msra.mxu3 %v4045_v63  ;;  %2194 = vmatpush.bf16.msra.mxu0 %v3645_v5  ;;  %v1988_v38 = vpop.f32.mrf.mxu0  ;;  %v1976_v63 = vadd.f32 %v5210_v34, %v723_v55  ;;  %v4217_v5 = vor.u32 %v4757_v16, %v4216_v62  ;;  %v4145_v34 = vor.u32 %v4739_v2, %v4144_v1 }
  0xfc   : > { %2207 = vmatpush.bf16.msra.mxu1 %v3773_v8  ;;  %v4208_v8 = vld [vmem:[#allocation5 + $0x80] sm:$0xf] }
  0xfd   : > { %2220 = vmatpush.bf16.msra.mxu2 %v3901_v9  ;;  %v4755_v9 = vld [vmem:[#allocation5 + $0x84] sm:$0xf0]  ;;  %v1989_v13 = vadd.f32 %v1988_v38, %v1976_v63  ;;  %v4253_v38 = vor.u32 %v4764_v31, %v4250_v23  ;;  %v4320_v63 = vld [vmem:[#allocation5 + $0x160] sm:$0xf]  ;;  %v4296_v31 = vld [vmem:[#allocation5 + $0x130] sm:$0xf] }
  0xfe   : > { %2195 = vmatmul.bf16.vlgmr.msra.gmra.mxu0 %v5158_v10  ;;  %v4249_v10 = vor.u32 %v4765_v28, %v4248_v27  ;;  %v2001_v41 = vpop.f32.mrf.mxu1  ;;  %v4209_v18 = vor.u32 %v4755_v9, %v4208_v8  ;;  %v4748_v28 = vld [vmem:[#allocation5 + $0x54] sm:$0xf]  ;;  %v4777_v23 = vld [vmem:[#allocation5 + $0x134] sm:$0xf0] }
  0xff   : > { %2233 = vmatpush.bf16.msra.mxu3 %v4029_v12  ;;  %2669 = vmatpush.bf16.msrb.mxu0 %v4201_v53  ;;  %v4768_v12 = vld [vmem:[#allocation5 + $0xf4] sm:$0xf]  ;;  %v4266_v53 = vld [vmem:[#allocation5 + $0xf8] sm:$0xf0] }
 0x100   : > { %2682 = vmatpush.bf16.msrb.mxu1 %v4265_v17  ;;  %2221 = vmatmul.bf16.vlgmr.msra.gmra.mxu2 %v5173_v42  ;;  %v4745_v42 = vld [vmem:[#allocation5 + $0x34] sm:$0xf0]  ;;  %v4756_v9 = vld [vmem:[#allocation5 + $0x94] sm:$0xf] }
 0x101   : > { %2208 = vmatmul.bf16.vlgmr.msra.gmra.mxu1 %v5171_v39  ;;  %v2259_v39 = vmul.f32 0.7978846, %v2255_v30  ;;  %v4169_v45 = vor.u32 %v4745_v42, %v4168_v40  ;;  %v4261_v30 = vor.u32 %v4766_v22, %v4258_v25  ;;  %v4242_v40 = vld [vmem:[#allocation5 + $0xc8] sm:$0xf0]  ;;  %v4779_v22 = vld [vmem:[#allocation5 + $0x144] sm:$0xf0] }
 0x102   : > { %2234 = vmatmul.bf16.vlgmr.msra.gmra.mxu3 %v5169_v35  ;;  %v4232_v35 = vld [vmem:[#allocation5 + $0xb0] sm:$0xf]  ;;  %v4754_v25 = vld [vmem:[#allocation5 + $0x84] sm:$0xf] }
 0x103   : > { %2670 = vmatpush.bf16.msrb.mxu0 %v4193_v21  ;;  %4881 = vtanh.f32 %v2259_v39  ;;  %v2014_v49 = vpop.f32.mrf.mxu2  ;;  %v4233_v50 = vor.u32 %v4761_v44, %v4232_v35  ;;  %v1990_v57 = vpop.f32.mrf.mxu0  ;;  %v4269_v21 = vor.u32 %v4768_v12, %v4266_v53  ;;  %v4762_v39 = vld [vmem:[#allocation5 + $0xc4] sm:$0xf] }
 0x104   : > { %2683 = vmatpush.bf16.msrb.mxu1 %v4257_v26  ;;  %v2002_v26 = vadd.f32 %v2001_v41, %v1989_v13  ;;  %v4245_v24 = vor.u32 %v4762_v39, %v4242_v40  ;;  %v4738_v12 = vld [vmem:[#allocation5 + $0x4] sm:$0xf] }
 0x105   : > { %v5222_v51 = vpop.f32.mrf.mxu3 }
 0x106   : > { %v2003_v59 = vpop.f32.mrf.mxu1 }
 0x107   : > { %2671 = vmatpush.bf16.msrb.mxu0 %v4185_v29  ;;  %v4186_v29 = vld [vmem:[#allocation5 + $0x58] sm:$0xf0] }
 0x108   : > { %2684 = vmatpush.bf16.msrb.mxu1 %v4249_v10  ;;  %v2015_v10 = vadd.f32 %v2014_v49, %v2002_v26  ;;  %v4189_v32 = vor.u32 %v4748_v28, %v4186_v29  ;;  %v4760_v49 = vld [vmem:[#allocation5 + $0xb4] sm:$0xf]  ;;  %v4210_v26 = vld [vmem:[#allocation5 + $0x88] sm:$0xf0] }
 0x109   : > { %v4882_v61 = vpop.eup %4881 }
 0x10a   : > { %v2267_v4 = vadd.f32 1.0, %v4882_v61  ;;  %v2028_v42 = vadd.f32 %v5222_v51, %v2015_v10  ;;  %v4162_v51 = vld [vmem:[#allocation5 + $0x28] sm:$0xf0]  ;;  %v4213_v10 = vor.u32 %v4754_v25, %v4210_v26  ;;  %v4795_v25 = vld [vmem:[#allocation5 + $0x1c4] sm:$0xf0] }
 0x10b   : > { %2672 = vmatpush.bf16.msrb.mxu0 %v4177_v36  ;;  %v2016_v15 = vpop.f32.mrf.mxu2  ;;  %v4178_v36 = vld [vmem:[#allocation5 + $0x48] sm:$0xf0]  ;;  %v4165_v1 = vor.u32 %v4742_v58, %v4162_v51  ;;  %v4782_v58 = vld [vmem:[#allocation5 + $0x164] sm:$0xf] }
 0x10c   : > { %2685 = vmatpush.bf16.msrb.mxu1 %v4241_v43  ;;  %v2271_v17 = vmul.f32 %v2267_v4, %v2239_v11  ;;  %v4181_v43 = vor.u32 %v4746_v33, %v4178_v36  ;;  %v4226_v61 = vld [vmem:[#allocation5 + $0xa8] sm:$0xf0]  ;;  %v4218_v11 = vld [vmem:[#allocation5 + $0x98] sm:$0xf0]  ;;  %v4774_v26 = vld [vmem:[#allocation5 + $0x124] sm:$0xf] }
 0x10d   : > { %v2029_v7 = vpop.f32.mrf.mxu3  ;;  %v4221_v20 = vor.u32 %v4756_v9, %v4218_v11  ;;  %v4322_v51 = vld [vmem:[#allocation5 + $0x168] sm:$0xf0]  ;;  %v4778_v11 = vld [vmem:[#allocation5 + $0x144] sm:$0xf] }
 0x10e   : > { %v5227_v27 = vpack.c.bf16 %v2271_v17, %v2271_v17  ;;  %v4304_v17 = vld [vmem:[#allocation5 + $0x140] sm:$0xf] }
 0x10f   : > { %2673 = vmatpush.bf16.msrb.mxu0 %v4169_v45  ;;  %v4744_v45 = vld [vmem:[#allocation5 + $0x34] sm:$0xf]  ;;  %v4305_v28 = vor.u32 %v4779_v22, %v4304_v17  ;;  %v4368_v22 = vld [vmem:[#allocation5 + $0x1c0] sm:$0xf] }
 0x110   : > { %2686 = vmatpush.bf16.msrb.mxu1 %v4233_v50  ;;  %v4234_v50 = vld [vmem:[#allocation5 + $0xb8] sm:$0xf0]  ;;  %v4173_v57 = vor.u32 %v4744_v45, %v4170_v47  ;;  %v4280_v45 = vld [vmem:[#allocation5 + $0x110] sm:$0xf]  ;;  %v4773_v47 = vld [vmem:[#allocation5 + $0x114] sm:$0xf0] }
 0x111   : > { %v4237_v59 = vor.u32 %v4760_v49, %v4234_v50  ;;  %v724_v49 = vperm.slane %v5198_v46, 2  ;;  %v4272_v50 = vld [vmem:[#allocation5 + $0x100] sm:$0xf]  ;;  %v4776_v17 = vld [vmem:[#allocation5 + $0x134] sm:$0xf] }
 0x113   : > { %2674 = vmatpush.bf16.msrb.mxu0 %v4161_v56  ;;  %v4329_v56 = vor.u32 %v4785_v54, %v4328_v52  ;;  %v4771_v52 = vld [vmem:[#allocation5 + $0x104] sm:$0xf0] }
 0x114   : > { %2687 = vmatpush.bf16.msrb.mxu1 %v4225_v60  ;;  %v4758_v60 = vld [vmem:[#allocation5 + $0xa4] sm:$0xf] }
 0x115   : > { %2695 = vmatpush.bf16.msrb.mxu2 %v4329_v56  ;;  %v4229_v8 = vor.u32 %v4758_v60, %v4226_v61  ;;  %v4330_v56 = vld [vmem:[#allocation5 + $0x178] sm:$0xf0] }
 0x117   : > { %2675 = vmatpush.bf16.msrb.mxu0 %v4153_v0  ;;  %v4783_v0 = vld [vmem:[#allocation5 + $0x164] sm:$0xf0] }
 0x118   : > { %2688 = vmatpush.bf16.msrb.mxu1 %v4217_v5  ;;  %v4321_v4 = vor.u32 %v4783_v0, %v4320_v63  ;;  %v4740_v5 = vld [vmem:[#allocation5 + $0x14] sm:$0xf]  ;;  %v4392_v0 = vld [vmem:[#allocation5 + $0x1f0] sm:$0xf] }
 0x119   : > { %v4157_v13 = vor.u32 %v4740_v5, %v4154_v6  ;;  %v4314_v5 = vld [vmem:[#allocation5 + $0x158] sm:$0xf0]  ;;  %v4384_v6 = vld [vmem:[#allocation5 + $0x1e0] sm:$0xf] }
 0x11a   : > { %2696 = vmatpush.bf16.msrb.mxu2 %v4321_v4 }
 0x11b   : > { %2676 = vmatpush.bf16.msrb.mxu0 %v4145_v34  ;;  %v2040_v41 = vpop.f32.mrf.mxu0  ;;  %v4312_v34 = vld [vmem:[#allocation5 + $0x150] sm:$0xf] }
 0x11c   : > { %2689 = vmatpush.bf16.msrb.mxu1 %v4209_v18  ;;  %v2041_v35 = vadd.f32 %v2040_v41, %v2028_v42  ;;  %v4146_v18 = vld [vmem:[#allocation5 + $0x8] sm:$0xf0]  ;;  %v4288_v42 = vld [vmem:[#allocation5 + $0x120] sm:$0xf]  ;;  %v4775_v41 = vld [vmem:[#allocation5 + $0x124] sm:$0xf0] }
 0x11d   : > { %v4149_v29 = vor.u32 %v4738_v12, %v4146_v18  ;;  %v4306_v12 = vld [vmem:[#allocation5 + $0x148] sm:$0xf0] }
 0x11e   : > { %2677 = vmatmul.bf16.vlgmr.msrb.gmra.mxu0 %v5227_v27  ;;  %v2053_v44 = vpop.f32.mrf.mxu1 }
 0x11f   : > { %2721 = vmatpush.bf16.msra.mxu0 %v4205_v14  ;;  %v2054_v55 = vadd.f32 %v2053_v44, %v2041_v35  ;;  %v4781_v14 = vld [vmem:[#allocation5 + $0x154] sm:$0xf0] }
 0x120   : > { %2734 = vmatpush.bf16.msra.mxu1 %v4269_v21  ;;  %v4313_v21 = vor.u32 %v4781_v14, %v4312_v34  ;;  %v4376_v34 = vld [vmem:[#allocation5 + $0x1d0] sm:$0xf]  ;;  %v4797_v14 = vld [vmem:[#allocation5 + $0x1d4] sm:$0xf0] }
 0x121   : > { %v2244_v37 = vmul.f32 0.044715, %v2054_v55  ;;  %v2240_v36 = vmul.f32 0.5, %v2054_v55 }
 0x122   : > { %2697 = vmatpush.bf16.msrb.mxu2 %v4313_v21 }
 0x123   : > { %2722 = vmatpush.bf16.msra.mxu0 %v4197_v48  ;;  %v2248_v62 = vmul.f32 %v2244_v37, %v2054_v55  ;;  %v5231_v16 = vpop.f32.mrf.mxu2  ;;  %v2042_v3 = vpop.f32.mrf.mxu0 }
 0x124   : > { %2735 = vmatpush.bf16.msra.mxu1 %v4261_v30  ;;  %v4780_v3 = vld [vmem:[#allocation5 + $0x154] sm:$0xf] }
 0x125   : > { %v5233_v2 = vpop.f32.mrf.mxu3  ;;  %v2252_v15 = vmul.f32 %v2248_v62, %v2054_v55  ;;  %v4325_v62 = vor.u32 %v4782_v58, %v4322_v51  ;;  %v4317_v9 = vor.u32 %v4780_v3, %v4314_v5  ;;  %v4336_v51 = vld [vmem:[#allocation5 + $0x180] sm:$0xf]  ;;  %v4798_v3 = vld [vmem:[#allocation5 + $0x1e4] sm:$0xf] }
 0x126   : > { %v2055_v7 = vpop.f32.mrf.mxu1  ;;  %2698 = vmatpush.bf16.msrb.mxu2 %v4305_v28  ;;  %v4369_v28 = vor.u32 %v4795_v25, %v4368_v22  ;;  %v4362_v22 = vld [vmem:[#allocation5 + $0x1b8] sm:$0xf0] }
 0x127   : > { %2723 = vmatpush.bf16.msra.mxu0 %v4189_v32  ;;  %v2256_v53 = vadd.f32 %v2252_v15, %v2054_v55  ;;  %v4297_v32 = vor.u32 %v4777_v23, %v4296_v31  ;;  %v4784_v55 = vld [vmem:[#allocation5 + $0x174] sm:$0xf]  ;;  %v4799_v7 = vld [vmem:[#allocation5 + $0x1e4] sm:$0xf0] }
 0x128   : > { %2736 = vmatpush.bf16.msra.mxu1 %v4253_v38  ;;  %v4333_v37 = vor.u32 %v4784_v55, %v4330_v56  ;;  %v4344_v56 = vld [vmem:[#allocation5 + $0x190] sm:$0xf] }
 0x129   : > { %v2260_v19 = vmul.f32 0.7978846, %v2256_v53 }
 0x12a   : > { %2699 = vmatpush.bf16.msrb.mxu2 %v4297_v32  ;;  %v4360_v32 = vld [vmem:[#allocation5 + $0x1b0] sm:$0xf] }
 0x12b   : > { %2724 = vmatpush.bf16.msra.mxu0 %v4181_v43  ;;  %4883 = vtanh.f32 %v2260_v19  ;;  %v2068_v48 = vpop.f32.mrf.mxu2  ;;  %v4289_v43 = vor.u32 %v4775_v41, %v4288_v42  ;;  %v4377_v19 = vor.u32 %v4797_v14, %v4376_v34  ;;  %v4794_v34 = vld [vmem:[#allocation5 + $0x1c4] sm:$0xf]  ;;  %v4370_v14 = vld [vmem:[#allocation5 + $0x1c8] sm:$0xf0] }
 0x12c   : > { %2737 = vmatpush.bf16.msra.mxu1 %v4245_v24  ;;  %v4281_v24 = vor.u32 %v4773_v47, %v4280_v45 }
 0x12d   : > { %v2081_v30 = vpop.f32.mrf.mxu3 }
 0x12e   : > { %2700 = vmatpush.bf16.msrb.mxu2 %v4289_v43  ;;  %v4352_v43 = vld [vmem:[#allocation5 + $0x1a0] sm:$0xf] }
 0x12f   : > { %2725 = vmatpush.bf16.msra.mxu0 %v4173_v57 }
 0x130   : > { %2738 = vmatpush.bf16.msra.mxu1 %v4237_v59  ;;  %v2067_v59 = vadd.f32 %v5231_v16, %v724_v49  ;;  %v4385_v16 = vor.u32 %v4799_v7, %v4384_v6  ;;  %v4796_v7 = vld [vmem:[#allocation5 + $0x1d4] sm:$0xf] }
 0x131   : > { %v4884_v33 = vpop.eup %4883 }
 0x132   : > { %v2268_v38 = vadd.f32 1.0, %v4884_v33  ;;  %2701 = vmatpush.bf16.msrb.mxu2 %v4281_v24  ;;  %v2080_v63 = vadd.f32 %v5233_v2, %v2067_v59  ;;  %v4793_v33 = vld [vmem:[#allocation5 + $0x1b4] sm:$0xf0]  ;;  %v4787_v59 = vld [vmem:[#allocation5 + $0x184] sm:$0xf0] }
 0x133   : > { %2726 = vmatpush.bf16.msra.mxu0 %v4165_v1  ;;  %v4801_v1 = vld [vmem:[#allocation5 + $0x1f4] sm:$0xf0] }
 0x134   : > { %2739 = vmatpush.bf16.msra.mxu1 %v4229_v8  ;;  %v2272_v39 = vmul.f32 %v2268_v38, %v2240_v36  ;;  %v4393_v15 = vor.u32 %v4801_v1, %v4392_v0  ;;  %v4772_v36 = vld [vmem:[#allocation5 + $0x114] sm:$0xf] }
 0x136   : > { %v2276_v40 = vpack.c.bf16 %v2272_v39, %v2272_v39  ;;  %2708 = vmatpush.bf16.msrb.mxu3 %v4393_v15  ;;  %v4361_v39 = vor.u32 %v4793_v33, %v4360_v32  ;;  %v725_v15 = vperm.slane %v5198_v46, 3 }
 0x137   : > { %2727 = vmatpush.bf16.msra.mxu0 %v4157_v13  ;;  %v4309_v13 = vor.u32 %v4778_v11, %v4306_v12 }
 0x138   : > { %2740 = vmatpush.bf16.msra.mxu1 %v4221_v20  ;;  %v4298_v20 = vld [vmem:[#allocation5 + $0x138] sm:$0xf0] }
 0x139   : > { %2690 = vmatmul.bf16.vlgmr.msrb.gmra.mxu1 %v2276_v40  ;;  %v4301_v21 = vor.u32 %v4776_v17, %v4298_v20  ;;  %v4373_v17 = vor.u32 %v4794_v34, %v4370_v14  ;;  %v4803_v14 = vld [vmem:[#allocation7 + $0x8] sm:$0xff] }
 0x13a   : > { %2709 = vmatpush.bf16.msrb.mxu3 %v4385_v16 }
 0x13b   : > { %2728 = vmatpush.bf16.msra.mxu0 %v4149_v29  ;;  %v2092_v35 = vpop.f32.mrf.mxu0  ;;  %v4290_v29 = vld [vmem:[#allocation5 + $0x128] sm:$0xf0] }
 0x13c   : > { %2741 = vmatpush.bf16.msra.mxu1 %v4213_v10  ;;  %v2093_v53 = vadd.f32 %v2092_v35, %v2080_v63  ;;  %v4293_v31 = vor.u32 %v4774_v26, %v4290_v29  ;;  %v4791_v35 = vld [vmem:[#allocation5 + $0x1a4] sm:$0xf0]  ;;  %v4788_v29 = vld [vmem:[#allocation5 + $0x194] sm:$0xf] }
 0x13d   : > { %v4353_v49 = vor.u32 %v4791_v35, %v4352_v43 }
 0x13e   : > { %2729 = vmatmul.bf16.vlgmr.msra.gmra.mxu0 %v5227_v27  ;;  %v2105_v44 = vpop.f32.mrf.mxu1  ;;  %v4273_v27 = vor.u32 %v4771_v52, %v4272_v50  ;;  %2710 = vmatpush.bf16.msrb.mxu3 %v4377_v19  ;;  %v4274_v50 = vld [vmem:[#allocation5 + $0x108] sm:$0xf0] }
 0x13f   : > { %v2106_v2 = vadd.f32 %v2105_v44, %v2093_v53  ;;  %v4770_v44 = vld [vmem:[#allocation5 + $0x104] sm:$0xf] }
 0x140   : > { %2702 = vmatpush.bf16.msrb.mxu2 %v4273_v27 }
 0x142   : > { %2711 = vmatpush.bf16.msrb.mxu3 %v4369_v28  ;;  %v4354_v28 = vld [vmem:[#allocation5 + $0x1a8] sm:$0xf0] }
 0x143   : > { %v2118_v54 = vpop.f32.mrf.mxu2  ;;  %v2094_v60 = vpop.f32.mrf.mxu0 }
 0x144   : > { %2747 = vmatpush.bf16.msra.mxu2 %v4333_v37  ;;  %v2119_v18 = vadd.f32 %v2118_v54, %v2106_v2  ;;  %v4277_v54 = vor.u32 %v4770_v44, %v4274_v50  ;;  %v4800_v60 = vld [vmem:[#allocation5 + $0x1f4] sm:$0xf] }
 0x145   : > { %v2131_v57 = vpop.f32.mrf.mxu3 }
 0x146   : > { %v2107_v61 = vpop.f32.mrf.mxu1  ;;  %v2132_v48 = vadd.f32 %v2131_v57, %v2119_v18  ;;  %2712 = vmatpush.bf16.msrb.mxu3 %v4361_v39  ;;  %v4789_v57 = vld [vmem:[#allocation5 + $0x194] sm:$0xf0] }
 0x147   : > { %v4345_v58 = vor.u32 %v4789_v57, %v4344_v56  ;;  %v4337_v61 = vor.u32 %v4787_v59, %v4336_v51 }
 0x148   : > { %2748 = vmatpush.bf16.msra.mxu2 %v4325_v62  ;;  %v4394_v62 = vld [vmem:[#allocation5 + $0x1f8] sm:$0xf0] }
 0x149   : > { %2742 = vmatmul.bf16.vlgmr.msra.gmra.mxu1 %v2276_v40  ;;  %v4282_v40 = vld [vmem:[#allocation5 + $0x118] sm:$0xf0]  ;;  %v4397_v1 = vor.u32 %v4800_v60, %v4394_v62 }
 0x14a   : > { %v4285_v42 = vor.u32 %v4772_v36, %v4282_v40  ;;  %2713 = vmatpush.bf16.msrb.mxu3 %v4353_v49  ;;  %v4786_v40 = vld [vmem:[#allocation5 + $0x184] sm:$0xf] }
 0x14b   : > { %v2120_v4 = vpop.f32.mrf.mxu2 }
 0x14c   : > { %2749 = vmatpush.bf16.msra.mxu2 %v4317_v9  ;;  %v4386_v4 = vld [vmem:[#allocation5 + $0x1e8] sm:$0xf0] }
 0x14d   : > { %v2133_v8 = vpop.f32.mrf.mxu3  ;;  %v4389_v5 = vor.u32 %v4798_v3, %v4386_v4 }
 0x14e   : > { %2714 = vmatpush.bf16.msrb.mxu3 %v4345_v58  ;;  %v4378_v8 = vld [vmem:[#allocation5 + $0x1d8] sm:$0xf0] }
 0x14f   : > { %v4381_v53 = vor.u32 %v4796_v7, %v4378_v8 }
 0x150   : > { %2750 = vmatpush.bf16.msra.mxu2 %v4309_v13 }
 0x152   : > { %2715 = vmatpush.bf16.msrb.mxu3 %v4337_v61 }
 0x154   : > { %2751 = vmatpush.bf16.msra.mxu2 %v4301_v21  ;;  %v4792_v21 = vld [vmem:[#allocation5 + $0x1b4] sm:$0xf] }
 0x155   : > { %v4365_v25 = vor.u32 %v4792_v21, %v4362_v22 }
 0x156   : > { %2760 = vmatpush.bf16.msra.mxu3 %v4397_v1 }
 0x158   : > { %2752 = vmatpush.bf16.msra.mxu2 %v4293_v31 }
 0x15a   : > { %2761 = vmatpush.bf16.msra.mxu3 %v4389_v5  ;;  %v4809_v5 = vld [vmem:[#allocation7 + $0x38] sm:$0xff] }
 0x15b   : > { %v2144_v30 = vpop.f32.mrf.mxu0  ;;  %2925 = vmatpush.bf16.msrb.mxu0 %v4809_v5 }
 0x15c   : > { %v2145_v23 = vadd.f32 %v2144_v30, %v2132_v48  ;;  %2753 = vmatpush.bf16.msra.mxu2 %v4285_v42  ;;  %v4790_v48 = vld [vmem:[#allocation5 + $0x1a4] sm:$0xf]  ;;  %v4338_v42 = vld [vmem:[#allocation5 + $0x188] sm:$0xf0] }
 0x15d   : > { %v4357_v31 = vor.u32 %v4790_v48, %v4354_v28  ;;  %v4341_v43 = vor.u32 %v4786_v40, %v4338_v42  ;;  %v4810_v28 = vld [vmem:[#allocation7 + $0x40] sm:$0xff] }
 0x15e   : > { %v2157_v10 = vpop.f32.mrf.mxu1  ;;  %v2245_v38 = vmul.f32 0.044715, %v2145_v23  ;;  %v2241_v9 = vmul.f32 0.5, %v2145_v23  ;;  %2762 = vmatpush.bf16.msra.mxu3 %v4381_v53 }
 0x15f   : > { %v2158_v11 = vadd.f32 %v2157_v10, %v725_v15 }
 0x160   : > { %v2249_v41 = vmul.f32 %v2245_v38, %v2145_v23  ;;  %2754 = vmatpush.bf16.msra.mxu2 %v4277_v54 }
 0x162   : > { %v2253_v45 = vmul.f32 %v2249_v41, %v2145_v23  ;;  %2763 = vmatpush.bf16.msra.mxu3 %v4373_v17  ;;  %v4815_v17 = vld [vmem:[#allocation7 + $0x68] sm:$0xff] }
 0x163   : > { %v2170_v47 = vpop.f32.mrf.mxu2  ;;  %v2146_v52 = vpop.f32.mrf.mxu0 }
 0x164   : > { %v2257_v27 = vadd.f32 %v2253_v45, %v2145_v23  ;;  %v2171_v2 = vadd.f32 %v2170_v47, %v2158_v11  ;;  %v4346_v23 = vld [vmem:[#allocation5 + $0x198] sm:$0xf0] }
 0x165   : > { %v2183_v24 = vpop.f32.mrf.mxu3  ;;  %v4349_v38 = vor.u32 %v4788_v29, %v4346_v23  ;;  %v4805_v11 = vld [vmem:[#allocation7 + $0x18] sm:$0xff] }
 0x166   : > { %v2159_v55 = vpop.f32.mrf.mxu1  ;;  %v2261_v37 = vmul.f32 0.7978846, %v2257_v27  ;;  %v2184_v46 = vadd.f32 %v2183_v24, %v2171_v2  ;;  %2764 = vmatpush.bf16.msra.mxu3 %v4365_v25  ;;  %v4804_v2 = vld [vmem:[#allocation7 + $0x10] sm:$0xff]  ;;  %v4811_v25 = vld [vmem:[#allocation7 + $0x48] sm:$0xff] }
 0x168   : > { %4885 = vtanh.f32 %v2261_v37  ;;  %v2343_v37 = vld [vmem:[%s5302_s4] sm:$0x3] }
 0x169   : > { %v2345_v58 = vperm.slane %v2343_v37, 0 }
 0x16a   : > { %2765 = vmatpush.bf16.msra.mxu3 %v4357_v31 }
 0x16b   : > { %v2172_v63 = vpop.f32.mrf.mxu2 }
 0x16d   : > { %v2185_v0 = vpop.f32.mrf.mxu3 }
 0x16e   : > { %v4886_v6 = vpop.eup %4885  ;;  %2766 = vmatpush.bf16.msra.mxu3 %v4349_v38  ;;  %v2346_v0 = vperm.slane %v2343_v37, 1  ;;  %v4822_v37 = vld [vmem:[%s5305_s7 + $0x20] sm:$0xff] }
 0x16f   : > { %v2269_v16 = vadd.f32 1.0, %v4886_v6  ;;  %v4808_v6 = vld [vmem:[#allocation7 + $0x30] sm:$0xff] }
 0x170   : > { %2926 = vmatpush.bf16.msrb.mxu0 %v4808_v6 }
 0x171   : > { %v2273_v12 = vmul.f32 %v2269_v16, %v2241_v9  ;;  %v4807_v9 = vld [vmem:[#allocation7 + $0x28] sm:$0xff]  ;;  %v4806_v16 = vld [vmem:[#allocation7 + $0x20] sm:$0xff] }
 0x172   : > { %2767 = vmatpush.bf16.msra.mxu3 %v4341_v43 }
 0x173   : > { %v2277_v13 = vpack.c.bf16 %v2273_v12, %v2273_v12  ;;  %v4817_v12 = vld [vmem:[#allocation7 + $0x78] sm:$0xff] }
 0x174   : > { %2927 = vmatpush.bf16.msrb.mxu0 %v4807_v9  ;;  %2938 = vmatpush.bf16.msrb.mxu1 %v4817_v12 }
 0x175   : > { %2703 = vmatmul.bf16.vlgmr.msrb.gmra.mxu2 %v2277_v13 }
 0x178   : > { %2928 = vmatpush.bf16.msrb.mxu0 %v4806_v16 }
 0x17b   : > { %v2196_v18 = vpop.f32.mrf.mxu0 }
 0x17c   : > { %v2197_v20 = vadd.f32 %v2196_v18, %v2184_v46  ;;  %2929 = vmatpush.bf16.msrb.mxu0 %v4805_v11  ;;  %v4802_v46 = vld [vmem:[#allocation7] sm:$0xff] }
 0x17d   : > { %v4814_v18 = vld [vmem:[#allocation7 + $0x60] sm:$0xff] }
 0x17e   : > { %v2209_v19 = vpop.f32.mrf.mxu1 }
 0x17f   : > { %v2210_v26 = vadd.f32 %v2209_v19, %v2197_v20  ;;  %v4813_v19 = vld [vmem:[#allocation7 + $0x58] sm:$0xff]  ;;  %v4812_v20 = vld [vmem:[#allocation7 + $0x50] sm:$0xff] }
 0x180   : > { %2930 = vmatpush.bf16.msrb.mxu0 %v4804_v2  ;;  %v4828_v2 = vld [vmem:[%s5307_s9 + $0x10] sm:$0xff] }
 0x183   : > { %v2222_v30 = vpop.f32.mrf.mxu2  ;;  %v2198_v33 = vpop.f32.mrf.mxu0 }
 0x184   : > { %v2223_v10 = vadd.f32 %v2222_v30, %v2210_v26  ;;  %2931 = vmatpush.bf16.msrb.mxu0 %v4803_v14  ;;  %v4826_v14 = vld [vmem:[%s5307_s9] sm:$0xff] }
 0x185   : > { %v2235_v32 = vpop.f32.mrf.mxu3  ;;  %2755 = vmatmul.bf16.vlgmr.msra.gmra.mxu2 %v2277_v13  ;;  %v4816_v13 = vld [vmem:[#allocation7 + $0x70] sm:$0xff] }
 0x186   : > { %v2211_v36 = vpop.f32.mrf.mxu1  ;;  %v2236_v39 = vadd.f32 %v2235_v32, %v2223_v10  ;;  %2939 = vmatpush.bf16.msrb.mxu1 %v4816_v13  ;;  %v4829_v13 = vld [vmem:[%s5307_s9 + $0x18] sm:$0xff] }
 0x188   : > { %v2246_v41 = vmul.f32 0.044715, %v2236_v39  ;;  %v2242_v52 = vmul.f32 0.5, %v2236_v39  ;;  %2932 = vmatpush.bf16.msrb.mxu0 %v4802_v46 }
 0x18a   : > { %v2250_v35 = vmul.f32 %v2246_v41, %v2236_v39  ;;  %2940 = vmatpush.bf16.msrb.mxu1 %v4815_v17  ;;  %v4877_v17 = vld [vmem:[%s5306_s8] ss:$0 sm:$0xff] }
 0x18b   : > { %v2224_v44 = vpop.f32.mrf.mxu2 }
 0x18c   : > { %v2254_v45 = vmul.f32 %v2250_v35, %v2236_v39 }
 0x18d   : > { %v2237_v47 = vpop.f32.mrf.mxu3 }
 0x18e   : > { %v2258_v24 = vadd.f32 %v2254_v45, %v2236_v39  ;;  %2941 = vmatpush.bf16.msrb.mxu1 %v4814_v18 }
 0x190   : > { %v2262_v49 = vmul.f32 0.7978846, %v2258_v24 }
 0x192   : > { %4887 = vtanh.f32 %v2262_v49  ;;  %2942 = vmatpush.bf16.msrb.mxu1 %v4813_v19 }
 0x196   : > { %2943 = vmatpush.bf16.msrb.mxu1 %v4812_v20 }
 0x198   : > { %v4888_v50 = vpop.eup %4887 }
 0x199   : > { %v2270_v54 = vadd.f32 1.0, %v4888_v50 }
 0x19a   : > { %2944 = vmatpush.bf16.msrb.mxu1 %v4811_v25 }
 0x19b   : > { %v2678_v27 = vpop.f32.mrf.mxu0  ;;  %v2274_v55 = vmul.f32 %v2270_v54, %v2242_v52 }
 0x19c   : > { %v2679_v59 = vadd.f32 %v2678_v27, %v2345_v58  ;;  %v4821_v58 = vld [vmem:[%s5305_s7 + $0x18] sm:$0xff] }
 0x19d   : > { %v2278_v56 = vpack.c.bf16 %v2274_v55, %v2274_v55  ;;  %v4825_v55 = vld [vmem:[%s5305_s7 + $0x38] sm:$0xff] }
 0x19e   : > { %2945 = vmatpush.bf16.msrb.mxu1 %v4810_v28  ;;  %3029 = vmatpush.bf16.msrb.mxu2 %v4825_v55 }
 0x19f   : > { %2716 = vmatmul.bf16.vlgmr.msrb.gmra.mxu3 %v2278_v56 }
 0x1a0   : > { %3096 = vmatpush.bf16.msrb.mxu3 %v4829_v13 }
 0x1a3   : > { %v2680_v57 = vpop.f32.mrf.mxu0 }
 0x1a4   : > { %v4823_v57 = vld [vmem:[%s5305_s7 + $0x28] sm:$0xff]  ;;  %3097 = vmatpush.bf16.msrb.mxu3 %v4828_v2 }
 0x1af   : > { %2768 = vmatmul.bf16.vlgmr.msra.gmra.mxu3 %v2278_v56  ;;  %v4824_v56 = vld [vmem:[%s5305_s7 + $0x30] sm:$0xff] }
 0x1b0   : > { %3030 = vmatpush.bf16.msrb.mxu2 %v4824_v56 }
 0x1b4   : > { %3031 = vmatpush.bf16.msrb.mxu2 %v4823_v57 }
 0x1b6   : > { %v2691_v60 = vpop.f32.mrf.mxu1 }
 0x1b7   : > { %v2692_v61 = vadd.f32 %v2691_v60, %v2679_v59  ;;  %v4819_v60 = vld [vmem:[%s5305_s7 + $0x8] sm:$0xff] }
 0x1b8   : > { %3032 = vmatpush.bf16.msrb.mxu2 %v4822_v37 }
 0x1bb   : > { %v2730_v51 = vpop.f32.mrf.mxu0 }
 0x1bc   : > { %v2731_v1 = vadd.f32 %v2730_v51, %v2346_v0  ;;  %3033 = vmatpush.bf16.msrb.mxu2 %v4821_v58  ;;  %v4820_v51 = vld [vmem:[%s5305_s7 + $0x10] sm:$0xff] }
 0x1be   : > { %v2693_v63 = vpop.f32.mrf.mxu1 }
 0x1bf   : > { %v4876_v63 = vld [vmem:[%s5304_s6] ss:$0 sm:$0xff] }
 0x1c0   : > { %3034 = vmatpush.bf16.msrb.mxu2 %v4820_v51 }
 0x1c3   : > { %v2732_v62 = vpop.f32.mrf.mxu0 }
 0x1c4   : > { %3035 = vmatpush.bf16.msrb.mxu2 %v4819_v60 }
 0x1c6   : > { %v2743_v3 = vpop.f32.mrf.mxu1 }
 0x1c7   : > { %v2744_v4 = vadd.f32 %v2743_v3, %v2731_v1 }
 0x1ce   : > { %v2745_v15 = vpop.f32.mrf.mxu1 }
 0x1f8   : > { %v2704_v7 = vpop.f32.mrf.mxu2 }
 0x1f9   : > { %v2705_v21 = vadd.f32 %v2704_v7, %v2692_v61  ;;  %v4818_v61 = vld [vmem:[%s5305_s7] sm:$0xff] }
 0x1fa   : > { %3036 = vmatpush.bf16.msrb.mxu2 %v4818_v61 }
 0x200   : > { %v2706_v8 = vpop.f32.mrf.mxu2 }
 0x208   : > { %v2756_v53 = vpop.f32.mrf.mxu2 }
 0x209   : > { %v2757_v32 = vadd.f32 %v2756_v53, %v2744_v4 }
 0x210   : > { %v2758_v34 = vpop.f32.mrf.mxu2 }
 0x211   : > { %v4827_v34 = vld [vmem:[%s5307_s9 + $0x8] sm:$0xff] }
 0x212   : > { %3098 = vmatpush.bf16.msrb.mxu3 %v4827_v34 }
 0x216   : > { %3099 = vmatpush.bf16.msrb.mxu3 %v4826_v14 }
 0x222   : > { %v2717_v22 = vpop.f32.mrf.mxu3 }
 0x223   : > { %v2718_v26 = vadd.f32 %v2717_v22, %v2705_v21 }
 0x225   : > { %v2775_v48 = vmul.f32 0.044715, %v2718_v26  ;;  %v2773_v40 = vmul.f32 0.5, %v2718_v26 }
 0x227   : > { %v2777_v29 = vmul.f32 %v2775_v48, %v2718_v26 }
 0x229   : > { %v2779_v30 = vmul.f32 %v2777_v29, %v2718_v26 }
 0x22a   : > { %v2719_v31 = vpop.f32.mrf.mxu3 }
 0x22b   : > { %v2781_v23 = vadd.f32 %v2779_v30, %v2718_v26 }
 0x22d   : > { %v2783_v10 = vmul.f32 0.7978846, %v2781_v23  ;;  %v4878_v23 = vld [vmem:[%s5308_s10] ss:$0 sm:$0xff] }
 0x22f   : > { %4889 = vtanh.f32 %v2783_v10 }
 0x232   : > { %v2769_v33 = vpop.f32.mrf.mxu3 }
 0x233   : > { %v2770_v36 = vadd.f32 %v2769_v33, %v2757_v32 }
 0x235   : > { %v4890_v38 = vpop.eup %4889  ;;  %v2776_v39 = vmul.f32 0.044715, %v2770_v36  ;;  %v2774_v50 = vmul.f32 0.5, %v2770_v36 }
 0x236   : > { %v2787_v42 = vadd.f32 1.0, %v4890_v38 }
 0x237   : > { %v2778_v41 = vmul.f32 %v2776_v39, %v2770_v36 }
 0x238   : > { %v2789_v43 = vmul.f32 %v2787_v42, %v2773_v40 }
 0x239   : > { %v2780_v35 = vmul.f32 %v2778_v41, %v2770_v36 }
 0x23a   : > { %v2771_v44 = vpop.f32.mrf.mxu3  ;;  %v2791_v45 = vpack.c.bf16 %v2789_v43, %v2789_v43 }
 0x23b   : > { %v2782_v47 = vadd.f32 %v2780_v35, %v2770_v36  ;;  %v4879_v44 = vld [vmem:[%s5309_s11] ss:$0 sm:$0xff] }
 0x23c   : > { %2933 = vmatmul.bf16.vlgmr.msrb.gmra.mxu0 %v2791_v45 }
 0x23d   : > { %v2784_v24 = vmul.f32 0.7978846, %v2782_v47 }
 0x23f   : > { %4891 = vtanh.f32 %v2784_v24 }
 0x245   : > { %v4892_v49 = vpop.eup %4891 }
 0x246   : > { %v2788_v52 = vadd.f32 1.0, %v4892_v49  ;;  %v4880_v49 = vld [vmem:[#allocation2] ss:$0 sm:$0xff] }
 0x248   : > { %v2790_v54 = vmul.f32 %v2788_v52, %v2774_v50 }
 0x24a   : > { %v2792_v27 = vpack.c.bf16 %v2790_v54, %v2790_v54 }
 0x24c   : > { %2946 = vmatmul.bf16.vlgmr.msrb.gmra.mxu1 %v2792_v27 }
 0x2b9   : > { %v2934_v59 = vpop.f32.mrf.mxu0 }
 0x2ba   : > { %v2935_v0 = vadd.f32 %v4876_v63, %v2934_v59 }
 0x2c1   : > { %v2936_v62 = vpop.f32.mrf.mxu0 }
 0x2c9   : > { %v2947_v1 = vpop.f32.mrf.mxu1 }
 0x2ca   : > { %v2948_v3 = vadd.f32 %v2947_v1, %v2935_v0 }
 0x2cc   : > { %v2952_v4 = vmul.f32 0.044715, %v2948_v3  ;;  %v2951_v16 = vmul.f32 0.5, %v2948_v3 }
 0x2ce   : > { %v2953_v15 = vmul.f32 %v2952_v4, %v2948_v3 }
 0x2d0   : > { %v2954_v5 = vmul.f32 %v2953_v15, %v2948_v3 }
 0x2d1   : > { %v2949_v6 = vpop.f32.mrf.mxu1 }
 0x2d2   : > { %v2955_v7 = vadd.f32 %v2954_v5, %v2948_v3 }
 0x2d4   : > { %v2956_v8 = vmul.f32 0.7978846, %v2955_v7 }
 0x2d6   : > { %4893 = vtanh.f32 %v2956_v8 }
 0x2dc   : > { %v4894_v9 = vpop.eup %4893 }
 0x2dd   : > { %v2958_v11 = vadd.f32 1.0, %v4894_v9 }
 0x2df   : > { %v2959_v12 = vmul.f32 %v2958_v11, %v2951_v16 }
 0x2e1   : > { %v2960_v53 = vpack.c.bf16 %v2959_v12, %v2959_v12 }
 0x2e3   : > { %3037 = vmatmul.bf16.vlgmr.msrb.gmra.mxu2 %v2960_v53 }
 0x366   : > { %v3038_v46 = vpop.f32.mrf.mxu2 }
 0x367   : > { %v3039_v18 = vadd.f32 %v4877_v17, %v3038_v46 }
 0x369   : > { %v3043_v19 = vmul.f32 0.044715, %v3039_v18  ;;  %v3042_v28 = vmul.f32 0.5, %v3039_v18 }
 0x36b   : > { %v3044_v20 = vmul.f32 %v3043_v19, %v3039_v18 }
 0x36d   : > { %v3045_v21 = vmul.f32 %v3044_v20, %v3039_v18 }
 0x36e   : > { %v3040_v22 = vpop.f32.mrf.mxu2 }
 0x36f   : > { %v3046_v25 = vadd.f32 %v3045_v21, %v3039_v18 }
 0x371   : > { %v3047_v26 = vmul.f32 0.7978846, %v3046_v25 }
 0x373   : > { %4895 = vtanh.f32 %v3047_v26 }
 0x379   : > { %v4896_v48 = vpop.eup %4895 }
 0x37a   : > { %v3049_v29 = vadd.f32 1.0, %v4896_v48 }
 0x37c   : > { %v3050_v30 = vmul.f32 %v3049_v29, %v3042_v28 }
 0x37e   : > { %v3051_v31 = vpack.c.bf16 %v3050_v30, %v3050_v30 }
 0x380   : > { %4510 = vmatmul.msk.bf16.vlgmr.msrb.gmra.mxu3 %vm3088_vm0, %v3051_v31 }
 0x403   : > { %v3101_v10 = vpop.f32.mrf.mxu3 }
 0x404   : > { %v3102_v32 = vadd.f32 %v4878_v23, %v3101_v10 }
 0x406   : > { %v3106_v33 = vmul.f32 0.044715, %v3102_v32  ;;  %v3105_v43 = vmul.f32 0.5, %v3102_v32 }
 0x408   : > { %v3107_v36 = vmul.f32 %v3106_v33, %v3102_v32 }
 0x40a   : > { %v3108_v38 = vmul.f32 %v3107_v36, %v3102_v32 }
 0x40b   : > { %v3103_v39 = vpop.f32.mrf.mxu3 }
 0x40c   : > { %v3109_v40 = vadd.f32 %v3108_v38, %v3102_v32 }
 0x40e   : > { %v3110_v42 = vmul.f32 0.7978846, %v3109_v40 }
 0x410   : > { %4897 = vtanh.f32 %v3110_v42 }
 0x416   : > { %v4898_v41 = vpop.eup %4897 }
 0x417   : > { %v3112_v35 = vadd.f32 1.0, %v4898_v41 }
 0x419   : > { %v3113_v45 = vmul.f32 %v3112_v35, %v3105_v43 }
 0x41b   : > { %v3118_v47 = vmul.f32 %v4879_v44, %v3113_v45 }
 0x41d   : > { %v3120_v24 = vsel %vm3119_vm1, %v3118_v47, 0.0 }
 0x41e   : > { %3121 = vadd.xlane.f32.xlu0 %v3120_v24 }
 0x491   : > { %v3122_v50 = vpop.xlane.xlu0 %3121 }
 0x492   : > { %v3127_v52 = vadd.f32 %v4880_v49, %v3122_v50 }
 0x494   : > { %v4511_v54 = vmul.f32 -1.442695, %v3127_v52 }
 0x496   : > { %4899 = vpow2.f32 %v4511_v54 }
 0x49c   : > { %v4900_v27 = vpop.eup %4899 }
 0x49d   : > { %v3131_v55 = vadd.f32 1.0, %v4900_v27 }
 0x49f   : > { %4901 = vrcp.f32 %v3131_v55  ;;  %v3143_v58 = vand.u32 2147483648, %v3131_v55  ;;  %v3141_v59 = vand.u32 2147483647, %v3131_v55  ;;  %vm3137_vm3 = vweird.f32 %v3131_v55 }
 0x4a1   : > { %v3144_v61 = vor.u32 1.1754944e-38, %v3143_v58  ;;  %vm3142_vm6 = vcmp.eq.f32.partialorder %v3141_v59, 8.507059e+37 }
 0x4a5   : > { %v4902_v56 = vpop.eup %4901 }
 0x4a6   : > { %v3133_v57 = vmul.f32 %v4902_v56, %v3131_v55  ;;  %vm3138_vm2 = vweird.f32 %v4902_v56 }
 0x4a7   : > { %vm3139_vm4 = vmor %vm3137_vm3, %vm3138_vm2 }
 0x4a8   : > { %v3134_v37 = vsub.f32 1.0, %v3133_v57 }
 0x4aa   : > { %v3135_v51 = vmul.f32 %v4902_v56, %v3134_v37 }
 0x4ac   : > { %v3136_v60 = vadd.f32 %v4902_v56, %v3135_v51 }
 0x4ae   : > { %v3140_v62 = vsel %vm3139_vm4, %v4902_v56, %v3136_v60 }
 0x4af   : > { %v3145_v63 = vsel %vm3142_vm6, %v3144_v61, %v3140_v62 }
 0x4b0   : > { %3148 = vst.msk [vmem:[%s490_s21] sm:$0xff] %vm3147_vm5, %v3145_v63 }
 0x4b1 PF: > { %s27_s27 = sadd.s32 1, %s5007_s27  }
 0x4b2   : > { %p24_p7 = scmp.ge.s32.totalorder %s27_s27, 4  }
 0x4b4   :  { %26 = sbr.rel (!%p24_p7) target bundleno = 5 (0x5), region = 115 }
 0x4b9   :  { %3168 = vsyncpa [#allocation4], 1 }
 0x4ba   :  { %3170 = vsyncpa [#allocation4 + $0x1], 1 }
 0x4bb   :  { %3171 = vsyncpa [#allocation6], 1 }

</bundles_post_ra>
